<compile_context>
chip_gen: v7x
topology: tpu7x:2x2x1
jax: 0.10.0
libtpu: 0.0.40
codegen_flags: <defaults>
</compile_context>

<pallas_src>
import functools

import jax
import jax.numpy as jnp
from jax.experimental import pallas as pl
from jax.experimental.pallas import tpu as pltpu

_NEG_BIG = -1e30  # finite mask fill (same result as -inf for partially padded columns)


def _attention_kernel(*refs, block_s, has_mask):
    """Grid = (batch blocks ["parallel"], source blocks ["arbitrary"]).

    Shapes inside the kernel (bb = batch block, bs = source block):
      inp_ref  (bb, D_in)        w_in_ref   (D_in, D_src)    w_octx_ref (D_src, D_out)
      src_ref  (bb, bs, D_src)   w_oin_ref  (D_in, D_out)    bias_ref   (bb, bs)
      out_ref  (bb, D_out)       attn_ref   (bb, S)          [resident accumulator]
      xq_sc (bb, D_src)  m_sc/l_sc (bb, 1)  acc_sc (bb, D_src)  mhist_sc (bb, ns)
    """
    if has_mask:
        (inp_ref, src_ref, bias_ref, w_in_ref, w_octx_ref, w_oin_ref,
         out_ref, attn_ref, xq_sc, m_sc, l_sc, acc_sc, mhist_sc) = refs
    else:
        (inp_ref, src_ref, w_in_ref, w_octx_ref, w_oin_ref,
         out_ref, attn_ref, xq_sc, m_sc, l_sc, acc_sc, mhist_sc) = refs
        bias_ref = None

    si = pl.program_id(1)
    ns = attn_ref.shape[1] // block_s            # static

    @pl.when(si == 0)
    def _init():
        # input_proj(input): one MXU matmul per batch block, resident for all S steps.
        xq = jnp.dot(inp_ref[...], w_in_ref[...],
                     preferred_element_type=jnp.float32)            # (bb, D_src) f32
        xq_sc[...] = xq.astype(xq_sc.dtype)
        m_sc[...] = jnp.full_like(m_sc, _NEG_BIG)
        l_sc[...] = jnp.zeros_like(l_sc)
        acc_sc[...] = jnp.zeros_like(acc_sc)
        mhist_sc[...] = jnp.full_like(mhist_sc, _NEG_BIG)
        # attn_ref needs no zero-init: every lane column is written exactly once below.

    src = src_ref[...]                                              # (bb, bs, D_src)

    # Scores for this source block: single-query batched matmul -> MXU.
    s = jnp.einsum('bqd,bkd->bqk', xq_sc[...][:, None, :], src,
                   preferred_element_type=jnp.float32)[:, 0, :]     # (bb, bs) f32
    if has_mask:
        s = s + bias_ref[...]                                       # additive 0 / -1e30

    # Online-softmax state update (all f32, per-batch scalars are lane-broadcasts).
    m_prev = m_sc[...]                                              # (bb, 1)
    m_new = jnp.maximum(m_prev, jnp.max(s, axis=-1, keepdims=True))
    alpha = jnp.exp(m_prev - m_new)
    p = jnp.exp(s - m_new)                                          # (bb, bs)

    l_sc[...] = alpha * l_sc[...] + jnp.sum(p, axis=-1, keepdims=True)
    acc_sc[...] = alpha * acc_sc[...] + jnp.einsum(
        'bqk,bkd->bqd', p.astype(src.dtype)[:, None, :], src,
        preferred_element_type=jnp.float32)[:, 0, :]                # (bb, D_src) f32
    m_sc[...] = m_new

    # Remember this block's max and stash the *unnormalized* p; the resident attn
    # buffer is fixed up in ONE pass at the last source step (deferred normalization,
    # no per-step rescale of the whole buffer).
    lane = jax.lax.broadcasted_iota(jnp.int32, mhist_sc.shape, 1)   # (bb, ns)
    mhist_sc[...] = jnp.where(lane == si, m_new, mhist_sc[...])
    start = pl.multiple_of(si * block_s, block_s)
    attn_ref[:, pl.ds(start, block_s)] = p

    @pl.when(si == ns - 1)
    def _finalize():
        l = l_sc[...]                                               # (bb, 1)
        inv_l = pl.reciprocal(l, approx=True)                       # EUP
        inv_l = inv_l * (2.0 - l * inv_l)                           # one Newton step
        m_fin = m_sc[...]                                           # (bb, 1)
        # Block j stored exp(s - m_j); true weight = exp(s - m_fin) / l.
        # Fully-masked blocks (m_j ~ -1e30 << m_fin) get scale 0; a column masked
        # across ALL of S gets uniform 1/S weights (reference would give NaN).
        scale = jnp.exp(mhist_sc[...] - m_fin) * inv_l              # (bb, ns)
        for j in range(ns):                                         # one pass, unrolled
            blk = attn_ref[:, j * block_s:(j + 1) * block_s]
            attn_ref[:, j * block_s:(j + 1) * block_s] = blk * scale[:, j:j + 1]
        ctx = acc_sc[...] * inv_l                                   # (bb, D_src) f32
        # output_proj(cat(ctx, input)) realized as two MXU matmuls, then tanh (EUP).
        y = (jnp.dot(ctx.astype(w_octx_ref.dtype), w_octx_ref[...],
                     preferred_element_type=jnp.float32)
             + jnp.dot(inp_ref[...], w_oin_ref[...],
                       preferred_element_type=jnp.float32))
        out_ref[...] = jnp.tanh(y).astype(out_ref.dtype)


def _pick_block(dim, quantum, target):
    """Largest divisor of `dim` that is a multiple of `quantum` and <= target, else dim."""
    if dim % quantum != 0:
        return dim
    best, c = None, quantum
    while c <= min(dim, target):
        if dim % c == 0:
            best = c
        c += quantum
    return best if best is not None else dim


def attention_forward(inp, source_hidden, padding_mask, w_in, w_out, *,
                      block_b=None, block_s=None, compute_dtype=jnp.bfloat16,
                      src_buffers=2):
    """maskgan Attention.forward semantics.

    inp:           (B, D_in)            decoder hidden state
    source_hidden: (S, B, D_src)        encoder states (PyTorch layout)
    padding_mask:  (S, B) bool or None  (True => padded position)
    w_in:          (D_src, D_in)        input_proj.weight   (PyTorch (out, in))
    w_out:         (D_out, D_src+D_in)  output_proj.weight
    Returns (out, attn) with out: (B, D_out), attn: (S, B)  -- matching the module.
    """
    B, d_in = inp.shape
    S, _, d_src = source_hidden.shape
    d_out = w_out.shape[0]
    cdt = compute_dtype

    # ---- plain-JAX glue: the (low-precision) cast is fused into the one batch-major
    #      transpose pass of the large tensor; everything else is tiny ----
    src_bsd = jnp.transpose(source_hidden, (1, 0, 2)).astype(cdt)   # (B, S, D_src)
    inp_c = jnp.asarray(inp, cdt)
    w_in_t = jnp.asarray(w_in, cdt).T                               # (D_in, D_src)
    w_out_ctx_t = jnp.asarray(w_out[:, :d_src], cdt).T              # (D_src, D_out)
    w_out_in_t = jnp.asarray(w_out[:, d_src:], cdt).T               # (D_in, D_out)

    # ---- block sizes (respect the (8,128)/full-dim BlockSpec rule) ----
    if block_s is None:
        block_s = _pick_block(S, 128, 512)     # lane-dense scores / bias tiles
    if block_b is None:
        # Keep >= 2 batch blocks when possible so "parallel" can shard across 2 TCs.
        block_b = B if B % 8 != 0 else _pick_block(B, 8, max(8, min(64, B // 2)))
    assert S % block_s == 0 and (block_s == S or block_s % 8 == 0)
    assert B % block_b == 0 and (block_b == B or block_b % 8 == 0)
    has_mask = padding_mask is not None
    if has_mask:
        assert block_s == S or block_s % 128 == 0, \
            "with a padding mask, block_s must be a multiple of 128 (or equal to S)"
    nb, ns = B // block_b, S // block_s

    # ---- specs ----
    if src_buffers == 2:
        src_spec = pl.BlockSpec((block_b, block_s, d_src), lambda bi, si: (bi, si, 0))
    else:  # optional deeper pipelining (e.g. v7x after enlarging tiles)
        src_spec = pl.BlockSpec((block_b, block_s, d_src), lambda bi, si: (bi, si, 0),
                                pipeline_mode=pl.Buffered(src_buffers))

    in_specs = [
        pl.BlockSpec((block_b, d_in), lambda bi, si: (bi, 0)),      # input (resident)
        src_spec,                                                   # src tiles
    ]
    args = [inp_c, src_bsd]
    if has_mask:
        # (B, S) additive bias, pipelined per (bi, si) tile; finite -1e30 fill.
        bias = jnp.where(jnp.asarray(padding_mask, jnp.bool_),
                         jnp.float32(_NEG_BIG), jnp.float32(0.0)).T  # (B, S)
        in_specs.append(pl.BlockSpec((block_b, block_s), lambda bi, si: (bi, si)))
        args.append(bias)
    in_specs += [
        pl.BlockSpec((d_in, d_src), lambda bi, si: (0, 0)),
        pl.BlockSpec((d_src, d_out), lambda bi, si: (0, 0)),
        pl.BlockSpec((d_in, d_out), lambda bi, si: (0, 0)),
    ]
    args += [w_in_t, w_out_ctx_t, w_out_in_t]

    out_specs = (
        pl.BlockSpec((block_b, d_out), lambda bi, si: (bi, 0)),
        pl.BlockSpec((block_b, S), lambda bi, si: (bi, 0)),   # resident lane-dense attn
    )
    out_shape = (jax.ShapeDtypeStruct((B, d_out), jnp.float32),
                 jax.ShapeDtypeStruct((B, S), jnp.float32))

    scratch_shapes = [
        pltpu.VMEM((block_b, d_src), cdt),          # projected query xq
        pltpu.VMEM((block_b, 1), jnp.float32),      # running max m
        pltpu.VMEM((block_b, 1), jnp.float32),      # running denominator l
        pltpu.VMEM((block_b, d_src), jnp.float32),  # context accumulator
        pltpu.VMEM((block_b, ns), jnp.float32),     # per-source-block max history
    ]

    # ---- explicit VMEM budget (double-buffered src incl. lane padding + resident
    #      attn + pipelined bias + slack for weights / IO / scratch) ----
    def _pad(n, q):
        return -(-n // q) * q
    csize = jnp.dtype(cdt).itemsize
    est = (2 * block_b * _pad(block_s, 8) * _pad(d_src, 128) * csize
           + 2 * _pad(block_b, 8) * _pad(S, 128) * 4
           + (2 * _pad(block_b, 8) * _pad(block_s, 128) * 4 if has_mask else 0)
           + (4 << 20))
    vmem_limit = int(min(max(2 * est, 32 * 1024 * 1024), 96 * 1024 * 1024))

    out, attn_bs = pl.pallas_call(
        functools.partial(_attention_kernel, block_s=block_s, has_mask=has_mask),
        grid_spec=pltpu.PrefetchScalarGridSpec(
            num_scalar_prefetch=0,
            grid=(nb, ns),
            in_specs=in_specs,
            out_specs=out_specs,
            scratch_shapes=scratch_shapes),
        out_shape=out_shape,
        compiler_params=pltpu.CompilerParams(
            dimension_semantics=("parallel", "arbitrary"),
            vmem_limit_bytes=vmem_limit),
    )(*args)

    # Module layout for the attention weights: (S, B).  (Tiny tensor; the big
    # source_hidden tensor only goes through the single fused transpose+cast above.)
    return out, attn_bs.T


def attention_reference(inp, source_hidden, padding_mask, w_in, w_out):
    """Pure-JAX reference replicating the PyTorch forward exactly."""
    x = inp @ w_in.T                                            # (B, D_src)
    scores = jnp.sum(source_hidden * x[None, :, :], axis=2)     # (S, B)
    if padding_mask is not None:
        scores = jnp.where(padding_mask, -jnp.inf, scores)
    attn = jax.nn.softmax(scores, axis=0)
    ctx = jnp.sum(attn[:, :, None] * source_hidden, axis=0)     # (B, D_src)
    cat = jnp.concatenate([ctx, inp], axis=1)
    out = jnp.tanh(cat @ w_out.T)
    return out, attn


if __name__ == "__main__":
    # Shapes consistent with the module: dec_hid_dim=32, source_embed_dim=48,
    # batch=16, source length=256.  block_b=8 / block_s=128 gives a (2, 2) grid, so
    # megacore batch sharding, the multi-block online softmax, the deferred
    # normalization, and fully-masked source blocks are all exercised.
    B, S = 16, 256
    dec_hid, src_embed = 32, 48

    key = jax.random.PRNGKey(0)
    k_in, k_src, k_win, k_wout = jax.random.split(key, 4)

    inp = jax.random.normal(k_in, (B, dec_hid), jnp.float32)
    source_hidden = jax.random.normal(k_src, (S, B, src_embed), jnp.float32)
    # deterministic stand-in for PyTorch's uniform_(-0.1, 0.1) init (bias=False)
    w_in = jax.random.uniform(k_win, (src_embed, dec_hid), jnp.float32, -0.1, 0.1)
    w_out = jax.random.uniform(k_wout, (dec_hid, src_embed + dec_hid), jnp.float32,
                               -0.1, 0.1)

    # Padding on the tail of a few source columns; two of them span both source
    # blocks (so their second block is fully masked -> deferred-scale zeroing path).
    padding_mask = jnp.zeros((S, B), jnp.bool_)
    padding_mask = padding_mask.at[S - 150:, 1].set(True)
    padding_mask = padding_mask.at[S - 20:, 7].set(True)
    padding_mask = padding_mask.at[S - 200:, 12].set(True)

    ref_out, ref_attn = attention_reference(inp, source_hidden, padding_mask, w_in, w_out)

    # Tolerances: at default matmul precision the MXU rounds f32 operands to bf16,
    # and the kernel routes the score/context reductions through the MXU while the
    # reference uses exact elementwise f32 — so value comparisons are bf16-grade.
    # Structural invariants (softmax normalization, masked positions exactly zero)
    # are checked tightly.
    TOL = dict(atol=5e-2, rtol=5e-2)

    # ---- f32 compute path, masked, multi-block online softmax + deferred rescale ----
    out, attn = attention_forward(inp, source_hidden, padding_mask, w_in, w_out,
                                  block_b=8, block_s=128, compute_dtype=jnp.float32)
    out = jax.block_until_ready(out)
    attn = jax.block_until_ready(attn)
    assert out.shape == (B, dec_hid) and attn.shape == (S, B)
    assert bool(jnp.isfinite(out).all()) and bool(jnp.isfinite(attn).all())
    col_sums = attn.sum(axis=0)
    assert jnp.allclose(col_sums, jnp.ones_like(col_sums), atol=1e-3), "softmax not normalized"
    assert float(jnp.max(jnp.where(padding_mask, attn, 0.0))) < 1e-6, "mask leaked"
    assert jnp.allclose(out, ref_out, **TOL), "f32 out mismatch"
    assert jnp.allclose(attn, ref_attn, **TOL), "f32 attn mismatch"

    # ---- no-mask variant, default tiles (single source block, ns == 1 path) ----
    ref_out_nm, ref_attn_nm = attention_reference(inp, source_hidden, None, w_in, w_out)
    out_nm, attn_nm = attention_forward(inp, source_hidden, None, w_in, w_out,
                                        compute_dtype=jnp.float32)
    out_nm = jax.block_until_ready(out_nm)
    assert jnp.allclose(out_nm, ref_out_nm, **TOL)
    assert jnp.allclose(attn_nm, ref_attn_nm, **TOL)

    # ---- default bf16 storage/compute path (f32 softmax math and accumulation) ----
    out_bf, attn_bf = attention_forward(inp, source_hidden, padding_mask, w_in, w_out,
                                        block_b=8, block_s=128)
    out_bf = jax.block_until_ready(out_bf)
    assert jnp.allclose(out_bf, ref_out, atol=7e-2, rtol=7e-2)
    assert jnp.allclose(attn_bf, ref_attn, atol=7e-2, rtol=7e-2)
    assert float(jnp.max(jnp.where(padding_mask, attn_bf, 0.0))) < 1e-6

    print("KERNEL_OK")
</pallas_src>

<mosaic_0001>
module attributes {stable_mosaic.version = 11 : i64} {
  func.func @_attention_kernel(%arg0: i32, %arg1: i32, %arg2: memref<8x32xf32, #tpu.memory_space<vmem>>, %arg3: memref<8x128x48xf32, #tpu.memory_space<vmem>>, %arg4: memref<8x128xf32, #tpu.memory_space<vmem>>, %arg5: memref<32x48xf32, #tpu.memory_space<vmem>>, %arg6: memref<48x32xf32, #tpu.memory_space<vmem>>, %arg7: memref<32x32xf32, #tpu.memory_space<vmem>>, %arg8: memref<8x32xf32, #tpu.memory_space<vmem>>, %arg9: memref<8x256xf32, #tpu.memory_space<vmem>>, %arg10: memref<8x48xf32, #tpu.memory_space<vmem>>, %arg11: memref<8x1xf32, #tpu.memory_space<vmem>>, %arg12: memref<8x1xf32, #tpu.memory_space<vmem>>, %arg13: memref<8x48xf32, #tpu.memory_space<vmem>>, %arg14: memref<8x2xf32, #tpu.memory_space<vmem>>) attributes {dimension_semantics = [#tpu.dimension_semantics<parallel>, #tpu.dimension_semantics<arbitrary>], iteration_bounds = array<i64: 2, 2>, scalar_prefetch = 0 : i64, scratch_operands = 5 : i64, tpu.core_type = #tpu.core_type<tc>, window_params = [{transform_indices = @transform_0, window_bounds = array<i64: 8, 32>}, {transform_indices = @transform_1, window_bounds = array<i64: 8, 128, 48>}, {transform_indices = @transform_2, window_bounds = array<i64: 8, 128>}, {pipeline_mode = #tpu.pipeline_mode<synchronous>, transform_indices = @transform_3, window_bounds = array<i64: 32, 48>}, {pipeline_mode = #tpu.pipeline_mode<synchronous>, transform_indices = @transform_4, window_bounds = array<i64: 48, 32>}, {pipeline_mode = #tpu.pipeline_mode<synchronous>, transform_indices = @transform_5, window_bounds = array<i64: 32, 32>}, {transform_indices = @transform_6, window_bounds = array<i64: 8, 32>}, {transform_indices = @transform_7, window_bounds = array<i64: 8, 256>}]} {
    %c0_i32 = arith.constant 0 : i32
    %0 = arith.cmpi eq, %arg1, %c0_i32 : i32
    %1 = arith.extui %0 : i1 to i32
    %c0_i32_0 = arith.constant 0 : i32
    %2 = arith.cmpi ne, %1, %c0_i32_0 : i32
    scf.if %2 {
      %c0_28 = arith.constant 0 : index
      %c0_29 = arith.constant 0 : index
      %49 = vector.load %arg2[%c0_28, %c0_29] : memref<8x32xf32, #tpu.memory_space<vmem>>, vector<8x32xf32>
      %c0_30 = arith.constant 0 : index
      %c0_31 = arith.constant 0 : index
      %50 = vector.load %arg5[%c0_30, %c0_31] : memref<32x48xf32, #tpu.memory_space<vmem>>, vector<32x48xf32>
      %cst_32 = arith.constant dense<0.000000e+00> : vector<8x48xf32>
      %51 = tpu.matmul %49, %50, %cst_32 {dimension_numbers = #tpu.dot_dimension_numbers<[1], [0], [0], [1], [0, 0, 1, 1], [], []>} : vector<8x32xf32>, vector<32x48xf32>, vector<8x48xf32> -> vector<8x48xf32>
      %c0_33 = arith.constant 0 : index
      %c0_34 = arith.constant 0 : index
      %52 = vector.load %arg10[%c0_33, %c0_34] : memref<8x48xf32, #tpu.memory_space<vmem>>, vector<8x48xf32>
      tpu.vector_store %arg10[%c0_33, %c0_34], %51 {strides = array<i32>} : memref<8x48xf32, #tpu.memory_space<vmem>>, vector<8x48xf32>,
      %cst_35 = arith.constant -1.000000e+30 : f32
      %53 = vector.broadcast %cst_35 : f32 to vector<8x1xf32>
      %c0_36 = arith.constant 0 : index
      %c0_37 = arith.constant 0 : index
      %54 = vector.load %arg11[%c0_36, %c0_37] : memref<8x1xf32, #tpu.memory_space<vmem>>, vector<8x1xf32>
      tpu.vector_store %arg11[%c0_36, %c0_37], %53 {strides = array<i32>} : memref<8x1xf32, #tpu.memory_space<vmem>>, vector<8x1xf32>,
      %cst_38 = arith.constant 0.000000e+00 : f32
      %55 = vector.broadcast %cst_38 : f32 to vector<8x1xf32>
      %c0_39 = arith.constant 0 : index
      %c0_40 = arith.constant 0 : index
      %56 = vector.load %arg12[%c0_39, %c0_40] : memref<8x1xf32, #tpu.memory_space<vmem>>, vector<8x1xf32>
      tpu.vector_store %arg12[%c0_39, %c0_40], %55 {strides = array<i32>} : memref<8x1xf32, #tpu.memory_space<vmem>>, vector<8x1xf32>,
      %cst_41 = arith.constant 0.000000e+00 : f32
      %57 = vector.broadcast %cst_41 : f32 to vector<8x48xf32>
      %c0_42 = arith.constant 0 : index
      %c0_43 = arith.constant 0 : index
      %58 = vector.load %arg13[%c0_42, %c0_43] : memref<8x48xf32, #tpu.memory_space<vmem>>, vector<8x48xf32>
      tpu.vector_store %arg13[%c0_42, %c0_43], %57 {strides = array<i32>} : memref<8x48xf32, #tpu.memory_space<vmem>>, vector<8x48xf32>,
      %cst_44 = arith.constant -1.000000e+30 : f32
      %59 = vector.broadcast %cst_44 : f32 to vector<8x2xf32>
      %c0_45 = arith.constant 0 : index
      %c0_46 = arith.constant 0 : index
      %60 = vector.load %arg14[%c0_45, %c0_46] : memref<8x2xf32, #tpu.memory_space<vmem>>, vector<8x2xf32>
      tpu.vector_store %arg14[%c0_45, %c0_46], %59 {strides = array<i32>} : memref<8x2xf32, #tpu.memory_space<vmem>>, vector<8x2xf32>,
    } else {
    }
    %c0 = arith.constant 0 : index
    %c0_1 = arith.constant 0 : index
    %c0_2 = arith.constant 0 : index
    %3 = vector.load %arg3[%c0, %c0_1, %c0_2] : memref<8x128x48xf32, #tpu.memory_space<vmem>>, vector<8x128x48xf32>
    %c0_3 = arith.constant 0 : index
    %c0_4 = arith.constant 0 : index
    %4 = vector.load %arg10[%c0_3, %c0_4] : memref<8x48xf32, #tpu.memory_space<vmem>>, vector<8x48xf32>
    %5 = vector.shape_cast %4 : vector<8x48xf32> to vector<8x1x48xf32>
    "tpu.trace_start"() <{level = 10 : i32, message = "bqd,bkd->bqk"}> : () -> ()
    %cst = arith.constant dense<0.000000e+00> : vector<8x1x128xf32>
    %6 = tpu.matmul %5, %3, %cst {dimension_numbers = #tpu.dot_dimension_numbers<[2], [2], [1], [1], [0, 0, 0, 1, 1, 1], [0], [0]>} : vector<8x1x48xf32>, vector<8x128x48xf32>, vector<8x1x128xf32> -> vector<8x1x128xf32>
    "tpu.trace_stop"() : () -> ()
    %7 = vector.shape_cast %6 : vector<8x1x128xf32> to vector<8x128xf32>
    %c0_5 = arith.constant 0 : index
    %c0_6 = arith.constant 0 : index
    %8 = vector.load %arg4[%c0_5, %c0_6] : memref<8x128xf32, #tpu.memory_space<vmem>>, vector<8x128xf32>
    %9 = arith.addf %7, %8 : vector<8x128xf32>
    %c0_7 = arith.constant 0 : index
    %c0_8 = arith.constant 0 : index
    %10 = vector.load %arg11[%c0_7, %c0_8] : memref<8x1xf32, #tpu.memory_space<vmem>>, vector<8x1xf32>
    %cst_9 = arith.constant dense<0xFF800000> : vector<8xf32>
    %11 = vector.multi_reduction <maximumf>, %9, %cst_9 [1] : vector<8x128xf32> to vector<8xf32>
    %12 = vector.shape_cast %11 : vector<8xf32> to vector<8x1xf32>
    %13 = arith.maximumf %10, %12 : vector<8x1xf32>
    %14 = arith.subf %10, %13 : vector<8x1xf32>
    %15 = math.exp %14 : vector<8x1xf32>
    %16 = vector.broadcast %13 : vector<8x1xf32> to vector<8x128xf32>
    %17 = arith.subf %9, %16 : vector<8x128xf32>
    %18 = math.exp %17 : vector<8x128xf32>
    %c0_10 = arith.constant 0 : index
    %c0_11 = arith.constant 0 : index
    %19 = vector.load %arg12[%c0_10, %c0_11] : memref<8x1xf32, #tpu.memory_space<vmem>>, vector<8x1xf32>
    %20 = arith.mulf %15, %19 : vector<8x1xf32>
    %cst_12 = arith.constant dense<0.000000e+00> : vector<8xf32>
    %21 = vector.multi_reduction <add>, %18, %cst_12 [1] : vector<8x128xf32> to vector<8xf32>
    %22 = vector.shape_cast %21 : vector<8xf32> to vector<8x1xf32>
    %23 = arith.addf %20, %22 : vector<8x1xf32>
    %c0_13 = arith.constant 0 : index
    %c0_14 = arith.constant 0 : index
    %24 = vector.load %arg12[%c0_13, %c0_14] : memref<8x1xf32, #tpu.memory_space<vmem>>, vector<8x1xf32>
    tpu.vector_store %arg12[%c0_13, %c0_14], %23 {strides = array<i32>} : memref<8x1xf32, #tpu.memory_space<vmem>>, vector<8x1xf32>,
    %c0_15 = arith.constant 0 : index
    %c0_16 = arith.constant 0 : index
    %25 = vector.load %arg13[%c0_15, %c0_16] : memref<8x48xf32, #tpu.memory_space<vmem>>, vector<8x48xf32>
    %26 = vector.broadcast %15 : vector<8x1xf32> to vector<8x48xf32>
    %27 = arith.mulf %26, %25 : vector<8x48xf32>
    %28 = vector.shape_cast %18 : vector<8x128xf32> to vector<8x1x128xf32>
    "tpu.trace_start"() <{level = 10 : i32, message = "bqk,bkd->bqd"}> : () -> ()
    %cst_17 = arith.constant dense<0.000000e+00> : vector<8x1x48xf32>
    %29 = tpu.matmul %28, %3, %cst_17 {dimension_numbers = #tpu.dot_dimension_numbers<[2], [1], [1], [2], [0, 0, 0, 1, 1, 2], [0], [0]>} : vector<8x1x128xf32>, vector<8x128x48xf32>, vector<8x1x48xf32> -> vector<8x1x48xf32>
    "tpu.trace_stop"() : () -> ()
    %30 = vector.shape_cast %29 : vector<8x1x48xf32> to vector<8x48xf32>
    %31 = arith.addf %27, %30 : vector<8x48xf32>
    %c0_18 = arith.constant 0 : index
    %c0_19 = arith.constant 0 : index
    %32 = vector.load %arg13[%c0_18, %c0_19] : memref<8x48xf32, #tpu.memory_space<vmem>>, vector<8x48xf32>
    tpu.vector_store %arg13[%c0_18, %c0_19], %31 {strides = array<i32>} : memref<8x48xf32, #tpu.memory_space<vmem>>, vector<8x48xf32>,
    %c0_20 = arith.constant 0 : index
    %c0_21 = arith.constant 0 : index
    %33 = vector.load %arg11[%c0_20, %c0_21] : memref<8x1xf32, #tpu.memory_space<vmem>>, vector<8x1xf32>
    tpu.vector_store %arg11[%c0_20, %c0_21], %13 {strides = array<i32>} : memref<8x1xf32, #tpu.memory_space<vmem>>, vector<8x1xf32>,
    %34 = tpu.iota {dimensions = array<i32: 1>} : vector<8x2xi32>
    %35 = vector.broadcast %arg1 : i32 to vector<8x2xi32>
    %36 = arith.cmpi eq, %34, %35 : vector<8x2xi32>
    %c0_22 = arith.constant 0 : index
    %c0_23 = arith.constant 0 : index
    %37 = vector.load %arg14[%c0_22, %c0_23] : memref<8x2xf32, #tpu.memory_space<vmem>>, vector<8x2xf32>
    %38 = vector.shape_cast %13 : vector<8x1xf32> to vector<8x1xf32>
    %39 = vector.broadcast %38 : vector<8x1xf32> to vector<8x2xf32>
    %40 = arith.select %36, %39, %37 : vector<8x2xi1>, vector<8x2xf32>
    %c0_24 = arith.constant 0 : index
    %c0_25 = arith.constant 0 : index
    %41 = vector.load %arg14[%c0_24, %c0_25] : memref<8x2xf32, #tpu.memory_space<vmem>>, vector<8x2xf32>
    tpu.vector_store %arg14[%c0_24, %c0_25], %40 {strides = array<i32>} : memref<8x2xf32, #tpu.memory_space<vmem>>, vector<8x2xf32>,
    %c128_i32 = arith.constant 128 : i32
    %42 = arith.muli %arg1, %c128_i32 : i32
    %43 = tpu.assume_multiple %42, 128 : i32
    %c0_26 = arith.constant 0 : index
    %44 = arith.index_cast %43 : i32 to index
    %45 = vector.load %arg9[%c0_26, %44] : memref<8x256xf32, #tpu.memory_space<vmem>>, vector<8x128xf32>
    tpu.vector_store %arg9[%c0_26, %44], %18 {strides = array<i32>} : memref<8x256xf32, #tpu.memory_space<vmem>>, vector<8x128xf32>,
    %c1_i32 = arith.constant 1 : i32
    %46 = arith.cmpi eq, %arg1, %c1_i32 : i32
    %47 = arith.extui %46 : i1 to i32
    %c0_i32_27 = arith.constant 0 : i32
    %48 = arith.cmpi ne, %47, %c0_i32_27 : i32
    scf.if %48 {
      %c0_28 = arith.constant 0 : index
      %c0_29 = arith.constant 0 : index
      %49 = vector.load %arg12[%c0_28, %c0_29] : memref<8x1xf32, #tpu.memory_space<vmem>>, vector<8x1xf32>
      %50 = tpu.reciprocal %49 {approx = true} : vector<8x1xf32> -> vector<8x1xf32>
      %51 = arith.mulf %49, %50 : vector<8x1xf32>
      %cst_30 = arith.constant 2.000000e+00 : f32
      %52 = vector.broadcast %cst_30 : f32 to vector<8x1xf32>
      %53 = arith.subf %52, %51 : vector<8x1xf32>
      %54 = arith.mulf %50, %53 : vector<8x1xf32>
      %c0_31 = arith.constant 0 : index
      %c0_32 = arith.constant 0 : index
      %55 = vector.load %arg11[%c0_31, %c0_32] : memref<8x1xf32, #tpu.memory_space<vmem>>, vector<8x1xf32>
      %c0_33 = arith.constant 0 : index
      %c0_34 = arith.constant 0 : index
      %56 = vector.load %arg14[%c0_33, %c0_34] : memref<8x2xf32, #tpu.memory_space<vmem>>, vector<8x2xf32>
      %57 = vector.broadcast %55 : vector<8x1xf32> to vector<8x2xf32>
      %58 = arith.subf %56, %57 : vector<8x2xf32>
      %59 = math.exp %58 : vector<8x2xf32>
      %60 = vector.broadcast %54 : vector<8x1xf32> to vector<8x2xf32>
      %61 = arith.mulf %59, %60 : vector<8x2xf32>
      %c0_35 = arith.constant 0 : index
      %c0_36 = arith.constant 0 : index
      %62 = vector.load %arg9[%c0_35, %c0_36] : memref<8x256xf32, #tpu.memory_space<vmem>>, vector<8x128xf32>
      %63 = vector.extract_strided_slice %61 {offsets = [0, 0], sizes = [8, 1], strides = [1, 1]} : vector<8x2xf32> to vector<8x1xf32>
      %64 = vector.broadcast %63 : vector<8x1xf32> to vector<8x128xf32>
      %65 = arith.mulf %62, %64 : vector<8x128xf32>
      %c0_37 = arith.constant 0 : index
      %c0_38 = arith.constant 0 : index
      %66 = vector.load %arg9[%c0_37, %c0_38] : memref<8x256xf32, #tpu.memory_space<vmem>>, vector<8x128xf32>
      tpu.vector_store %arg9[%c0_37, %c0_38], %65 {strides = array<i32>} : memref<8x256xf32, #tpu.memory_space<vmem>>, vector<8x128xf32>,
      %c0_39 = arith.constant 0 : index
      %c128 = arith.constant 128 : index
      %67 = vector.load %arg9[%c0_39, %c128] : memref<8x256xf32, #tpu.memory_space<vmem>>, vector<8x128xf32>
      %68 = vector.extract_strided_slice %61 {offsets = [0, 1], sizes = [8, 1], strides = [1, 1]} : vector<8x2xf32> to vector<8x1xf32>
      %69 = vector.broadcast %68 : vector<8x1xf32> to vector<8x128xf32>
      %70 = arith.mulf %67, %69 : vector<8x128xf32>
      %c0_40 = arith.constant 0 : index
      %c128_41 = arith.constant 128 : index
      %71 = vector.load %arg9[%c0_40, %c128_41] : memref<8x256xf32, #tpu.memory_space<vmem>>, vector<8x128xf32>
      tpu.vector_store %arg9[%c0_40, %c128_41], %70 {strides = array<i32>} : memref<8x256xf32, #tpu.memory_space<vmem>>, vector<8x128xf32>,
      %c0_42 = arith.constant 0 : index
      %c0_43 = arith.constant 0 : index
      %72 = vector.load %arg13[%c0_42, %c0_43] : memref<8x48xf32, #tpu.memory_space<vmem>>, vector<8x48xf32>
      %73 = vector.broadcast %54 : vector<8x1xf32> to vector<8x48xf32>
      %74 = arith.mulf %72, %73 : vector<8x48xf32>
      %c0_44 = arith.constant 0 : index
      %c0_45 = arith.constant 0 : index
      %75 = vector.load %arg6[%c0_44, %c0_45] : memref<48x32xf32, #tpu.memory_space<vmem>>, vector<48x32xf32>
      %cst_46 = arith.constant dense<0.000000e+00> : vector<8x32xf32>
      %76 = tpu.matmul %74, %75, %cst_46 {dimension_numbers = #tpu.dot_dimension_numbers<[1], [0], [0], [1], [0, 0, 1, 1], [], []>} : vector<8x48xf32>, vector<48x32xf32>, vector<8x32xf32> -> vector<8x32xf32>
      %c0_47 = arith.constant 0 : index
      %c0_48 = arith.constant 0 : index
      %77 = vector.load %arg2[%c0_47, %c0_48] : memref<8x32xf32, #tpu.memory_space<vmem>>, vector<8x32xf32>
      %c0_49 = arith.constant 0 : index
      %c0_50 = arith.constant 0 : index
      %78 = vector.load %arg7[%c0_49, %c0_50] : memref<32x32xf32, #tpu.memory_space<vmem>>, vector<32x32xf32>
      %cst_51 = arith.constant dense<0.000000e+00> : vector<8x32xf32>
      %79 = tpu.matmul %77, %78, %cst_51 {dimension_numbers = #tpu.dot_dimension_numbers<[1], [0], [0], [1], [0, 0, 1, 1], [], []>} : vector<8x32xf32>, vector<32x32xf32>, vector<8x32xf32> -> vector<8x32xf32>
      %80 = arith.addf %76, %79 : vector<8x32xf32>
      %81 = math.tanh %80 : vector<8x32xf32>
      %c0_52 = arith.constant 0 : index
      %c0_53 = arith.constant 0 : index
      %82 = vector.load %arg8[%c0_52, %c0_53] : memref<8x32xf32, #tpu.memory_space<vmem>>, vector<8x32xf32>
      tpu.vector_store %arg8[%c0_52, %c0_53], %81 {strides = array<i32>} : memref<8x32xf32, #tpu.memory_space<vmem>>, vector<8x32xf32>,
    } else {
    }
    return
  }
  func.func @transform_0(%arg0: i32, %arg1: i32) -> (i32, i32) {
    %c0_i32 = arith.constant 0 : i32
    %c0_i32_0 = arith.constant 0 : i32
    return %arg0, %c0_i32 : i32, i32
  }
  func.func @transform_1(%arg0: i32, %arg1: i32) -> (i32, i32, i32) {
    %c0_i32 = arith.constant 0 : i32
    %c0_i32_0 = arith.constant 0 : i32
    return %arg0, %arg1, %c0_i32 : i32, i32, i32
  }
  func.func @transform_2(%arg0: i32, %arg1: i32) -> (i32, i32) {
    %c0_i32 = arith.constant 0 : i32
    return %arg0, %arg1 : i32, i32
  }
  func.func @transform_3(%arg0: i32, %arg1: i32) -> (i32, i32) {
    %c0_i32 = arith.constant 0 : i32
    %c0_i32_0 = arith.constant 0 : i32
    %c0_i32_1 = arith.constant 0 : i32
    return %c0_i32, %c0_i32_0 : i32, i32
  }
  func.func @transform_4(%arg0: i32, %arg1: i32) -> (i32, i32) {
    %c0_i32 = arith.constant 0 : i32
    %c0_i32_0 = arith.constant 0 : i32
    %c0_i32_1 = arith.constant 0 : i32
    return %c0_i32, %c0_i32_0 : i32, i32
  }
  func.func @transform_5(%arg0: i32, %arg1: i32) -> (i32, i32) {
    %c0_i32 = arith.constant 0 : i32
    %c0_i32_0 = arith.constant 0 : i32
    %c0_i32_1 = arith.constant 0 : i32
    return %c0_i32, %c0_i32_0 : i32, i32
  }
  func.func @transform_6(%arg0: i32, %arg1: i32) -> (i32, i32) {
    %c0_i32 = arith.constant 0 : i32
    %c0_i32_0 = arith.constant 0 : i32
    return %arg0, %c0_i32 : i32, i32
  }
  func.func @transform_7(%arg0: i32, %arg1: i32) -> (i32, i32) {
    %c0_i32 = arith.constant 0 : i32
    %c0_i32_0 = arith.constant 0 : i32
    return %arg0, %c0_i32 : i32, i32
  }
}

</mosaic_0001>

<bundles_post_ra>
// kernel: tpu_custom_call.1
= control target key start
LH: loop header
LB: loop body
LE: loop exit
PB: predicated region body
PF: predicated region fallthrough
CT: control target
= control target key end

     0   :  { %s6434_s0 = inlined_call_operand.vmem [shape: f32[16,32], index: 0, kind: input, shape index: {}]   ;;  %s6435_s1 = inlined_call_operand.vmem [shape: f32[16,256,48], index: 1, kind: input, shape index: {}]   ;;  %s6436_s2 = inlined_call_operand.vmem [shape: f32[16,256], index: 2, kind: input, shape index: {}]   ;;  %s6437_s3 = inlined_call_operand.vmem [shape: f32[32,48], index: 3, kind: input, shape index: {}]   ;;  %s6438_s4 = inlined_call_operand.vmem [shape: f32[48,32], index: 4, kind: input, shape index: {}]   ;;  %s6439_s5 = inlined_call_operand.vmem [shape: f32[32,32], index: 5, kind: input, shape index: {}]   ;;  %s6440_s6 = inlined_call_operand.hbm [shape: f32[16,32], index: 6, kind: output, shape index: {0}]   ;;  %s6441_s7 = inlined_call_operand.hbm [shape: f32[16,256], index: 7, kind: output, shape index: {1}]  }
   0x1   :  { %6473 = sst [smem:[#allocation42_spill]] %s6435_s1 }
   0x2   :  { %13 = vsyncpa [#allocation9], 0 }
   0x3   :  { %15 = vsyncpa [#allocation9 + $0x1], 0 }
   0x4   :  { %16 = vsyncpa [#allocation11], 0 }
   0x5   :  { %18 = vsyncpa [#allocation11 + $0x1], 0  ;;  %s5110_s24 = smov 0   ;;  %s5112_s25 = smov 0  }
   0x6   :  { %s5114_s26 = smov 0   ;;  %s5116_s27 = smov 0  }
   0x7   :  { %s5118_s28 = smov 0   ;;  %s5120_s29 = smov 0  }
   0x8   :  { %s5122_s30 = smov 0   ;;  %s5124_s8 = smov 0  }
   0x9   :  { %s5126_s9 = smov 0   ;;  %s5128_s10 = smov 0  }
   0xa LB: > { %6474 = sst [smem:[#allocation14_spill]] %s5020_s25  ;;  %s3249_s11 = sadd.s32 4294967295, %s5052_s10   ;;  %s5052_s10 = sphi %s5128_s10, %s24_s10   ;;  %s5048_s9 = sphi %s5126_s9, %s6541_s9   ;;  %s5044_s8 = sphi %s5124_s8, %s6540_s8   ;;  %s5040_s30 = sphi %s5122_s30, %s6539_s30   ;;  %s5036_s29 = sphi %s5120_s29, %s6538_s29   ;;  %s5032_s28 = sphi %s5118_s28, %s6537_s28   ;;  %s5028_s27 = sphi %s5116_s27, %s6536_s27   ;;  %s5024_s26 = sphi %s5114_s26, %s6535_s26   ;;  %s5020_s25 = sphi %s5112_s25, %s6534_s25   ;;  %s5016_s24 = sphi %s5110_s24, %s6533_s24  }
   0xb   : > { %6475 = sst [smem:[#allocation15_spill]] %s5024_s26  ;;  %s3250_s12 = sadd.s32 4294967294, %s5052_s10  }
   0xc   : > { %6476 = sst [smem:[#allocation16_spill]] %s5032_s28  ;;  %s33_s13 = sadd.s32 1, %s5044_s8 }
   0xd   : > { %6477 = sst [smem:[#allocation17_spill]] %s5044_s8  ;;  %s36_s14 = sadd.s32 1, %s5048_s9 }
   0xe   : > { %6478 = sst [smem:[#allocation18_spill]] %s5048_s9  ;;  %p34_p0 = scmp.ge.s32.totalorder %s33_s13, 2 }
   0xf   : > { %s71_s15 = sadd.s32 1, %s5032_s28  ;;  %p78_p1 = scmp.ne.s32.totalorder %s5032_s28, %s5028_s27 }
  0x10   : > { %p79_p2 = scmp.eq.s32.totalorder %s5052_s10, 0  ;;  %s6543_s13 = smov (%p34_p0, %s33_s13), 0 }
  0x11   : > { %6479 = sst [smem:[#allocation19_spill]] %s6543_s13  ;;  %s6545_s14 = smov (!%p34_p0, %s36_s14), %s5048_s9 }
  0x12   : > { %s67_s16 = ssub.s32 %s5044_s8, %s6543_s13  ;;  %p5173_p3 = por %p79_p2, %p78_p1 }
  0x13   : > { %p38_p4 = scmp.ge.s32.totalorder %s6545_s14, 2  ;;  %s188_s18 = sadd.s32 1, %s5024_s26 }
  0x14   : > { %p198_p5 = scmp.ne.s32.totalorder %s5024_s26, %s5020_s25  ;;  %p199_p6 = scmp.eq.s32.totalorder %s3249_s11, 3 }
  0x15   : > { %s6547_s14 = smov (%p38_p4, %s6545_s14), 0  ;;  %p204_p8 = scmp.ne.s32.totalorder %s5020_s25, %s5016_s24 }
  0x16   : > { %6481 = sst [smem:[#allocation20_spill]] %s6547_s14  ;;  %p5182_p7 = por %p199_p6, %p198_p5 }
  0x17   : > { %s66_s20 = ssub.s32 %s5048_s9, %s6547_s14  ;;  %p205_p9 = scmp.eq.s32.totalorder %s3250_s12, 3 }
  0x18   : > { %s68_s21 = sor.u32 %s67_s16, %s66_s20  ;;  %p186_p10 = scmp.eq.s32.totalorder %s66_s20, 0 }
  0x19   : > { %p69_p11 = scmp.eq.s32.totalorder %s68_s21, 0  ;;  %p5190_p12 = por %p205_p9, %p204_p8 }
  0x1a   : > { %s5195_s23 = scalar_select %p186_p10, %s5024_s26, %s188_s18  }
  0x1b   : > { %s6483_s22 = scalar_select %p5190_p12, 1, 0 }
  0x1c   : > { %6485 = sst [smem:[#allocation22_spill]] %s5195_s23  ;;  %p3252_p13 = scmp.ge.s32.totalorder %s5052_s10, 4 }
  0x1d   : > { %6484 = sst [smem:[#allocation21_spill]] %s6483_s22 }
  0x1e   : > { %s5198_s11 = scalar_select %p69_p11, %s5032_s28, %s71_s15  }
  0x1f   : > { %256 = sbr.rel (%p3252_p13) target bundleno = 112 (0x70), region = 28 }
  0x20   : > { %6486 = sst [smem:[#allocation23_spill]] %s5198_s11 }
  0x26   : > { %266 = sbr.rel (!%p5173_p3) target bundleno = 112 (0x70), region = 36  ;;  %s268_s12 = sand.u32 (%p5173_p3), 1, %s5032_s28  }
  0x27   : > { %s3255_s16 = sshll.u32 (%p5173_p3), %s5044_s8, 4  ;;  %s3253_s20 = sshll.u32 (%p5173_p3), %s268_s12, 10 }
  0x28   : > { %s3415_s21 = sshll.u32 (%p5173_p3), %s5048_s9, 8  ;;  %s6487_s1 = sld [smem:[#allocation42_spill]] (%p5173_p3) }
  0x29   : > { %s274_s14 = sadd.s32 (%p5173_p3), %s3415_s21, %s3255_s16  ;;  %s5214_s17 = scalar_lea.vmem (%p5173_p3), [#allocation7], %s3253_s20 }
  0x2a   : > { %s3257_s13 = sshll.u32 (%p5173_p3), %s274_s14, 3 }
  0x2e   : > { %s5209_s15 = scalar_lea.vmem %s6487_s1, %s3257_s13 }
  0x2f   : > { %v558_v0 = vld [vmem:[%s5209_s15] sm:$0xff]  ;;  %v560_v1 = vld [vmem:[%s5209_s15 + $0x8] sm:$0xff]  ;;  %v562_v2 = vld [vmem:[%s5209_s15 + $0x10] sm:$0xff] }
  0x30   : > { %559 = vst [vmem:[%s5214_s17] sm:$0xff] %v558_v0  ;;  %561 = vst [vmem:[%s5214_s17 + $0x8] sm:$0xff] %v560_v1  ;;  %v564_v3 = vld [vmem:[%s5209_s15 + $0x18] sm:$0xff]  ;;  %v566_v4 = vld [vmem:[%s5209_s15 + $0x20] sm:$0xff] }
  0x31   : > { %563 = vst [vmem:[%s5214_s17 + $0x10] sm:$0xff] %v562_v2  ;;  %v568_v5 = vld [vmem:[%s5209_s15 + $0x28] sm:$0xff]  ;;  %565 = vst [vmem:[%s5214_s17 + $0x18] sm:$0xff] %v564_v3  ;;  %v570_v6 = vld [vmem:[%s5209_s15 + $0x30] sm:$0xff] }
  0x32   : > { %567 = vst [vmem:[%s5214_s17 + $0x20] sm:$0xff] %v566_v4  ;;  %569 = vst [vmem:[%s5214_s17 + $0x28] sm:$0xff] %v568_v5  ;;  %v572_v7 = vld [vmem:[%s5209_s15 + $0x38] sm:$0xff]  ;;  %v574_v8 = vld [vmem:[%s5209_s15 + $0x40] sm:$0xff] }
  0x33   : > { %571 = vst [vmem:[%s5214_s17 + $0x30] sm:$0xff] %v570_v6  ;;  %573 = vst [vmem:[%s5214_s17 + $0x38] sm:$0xff] %v572_v7  ;;  %v576_v9 = vld [vmem:[%s5209_s15 + $0x48] sm:$0xff]  ;;  %v578_v10 = vld [vmem:[%s5209_s15 + $0x50] sm:$0xff] }
  0x34   : > { %575 = vst [vmem:[%s5214_s17 + $0x40] sm:$0xff] %v574_v8  ;;  %v580_v11 = vld [vmem:[%s5209_s15 + $0x58] sm:$0xff]  ;;  %577 = vst [vmem:[%s5214_s17 + $0x48] sm:$0xff] %v576_v9  ;;  %v582_v12 = vld [vmem:[%s5209_s15 + $0x60] sm:$0xff] }
  0x35   : > { %579 = vst [vmem:[%s5214_s17 + $0x50] sm:$0xff] %v578_v10  ;;  %581 = vst [vmem:[%s5214_s17 + $0x58] sm:$0xff] %v580_v11  ;;  %v584_v13 = vld [vmem:[%s5209_s15 + $0x68] sm:$0xff]  ;;  %v586_v14 = vld [vmem:[%s5209_s15 + $0x70] sm:$0xff] }
  0x36   : > { %583 = vst [vmem:[%s5214_s17 + $0x60] sm:$0xff] %v582_v12  ;;  %585 = vst [vmem:[%s5214_s17 + $0x68] sm:$0xff] %v584_v13  ;;  %v588_v15 = vld [vmem:[%s5209_s15 + $0x78] sm:$0xff]  ;;  %v590_v16 = vld [vmem:[%s5209_s15 + $0x100] sm:$0xff] }
  0x37   : > { %587 = vst [vmem:[%s5214_s17 + $0x70] sm:$0xff] %v586_v14  ;;  %v592_v17 = vld [vmem:[%s5209_s15 + $0x108] sm:$0xff]  ;;  %589 = vst [vmem:[%s5214_s17 + $0x78] sm:$0xff] %v588_v15  ;;  %v594_v18 = vld [vmem:[%s5209_s15 + $0x110] sm:$0xff] }
  0x38   : > { %591 = vst [vmem:[%s5214_s17 + $0x80] sm:$0xff] %v590_v16  ;;  %593 = vst [vmem:[%s5214_s17 + $0x88] sm:$0xff] %v592_v17  ;;  %v596_v19 = vld [vmem:[%s5209_s15 + $0x118] sm:$0xff]  ;;  %v598_v20 = vld [vmem:[%s5209_s15 + $0x120] sm:$0xff] }
  0x39   : > { %595 = vst [vmem:[%s5214_s17 + $0x90] sm:$0xff] %v594_v18  ;;  %597 = vst [vmem:[%s5214_s17 + $0x98] sm:$0xff] %v596_v19  ;;  %v600_v21 = vld [vmem:[%s5209_s15 + $0x128] sm:$0xff]  ;;  %v602_v22 = vld [vmem:[%s5209_s15 + $0x130] sm:$0xff] }
  0x3a   : > { %599 = vst [vmem:[%s5214_s17 + $0xa0] sm:$0xff] %v598_v20  ;;  %v604_v23 = vld [vmem:[%s5209_s15 + $0x138] sm:$0xff]  ;;  %601 = vst [vmem:[%s5214_s17 + $0xa8] sm:$0xff] %v600_v21  ;;  %v606_v24 = vld [vmem:[%s5209_s15 + $0x140] sm:$0xff] }
  0x3b   : > { %603 = vst [vmem:[%s5214_s17 + $0xb0] sm:$0xff] %v602_v22  ;;  %605 = vst [vmem:[%s5214_s17 + $0xb8] sm:$0xff] %v604_v23  ;;  %v608_v25 = vld [vmem:[%s5209_s15 + $0x148] sm:$0xff]  ;;  %v610_v26 = vld [vmem:[%s5209_s15 + $0x150] sm:$0xff] }
  0x3c   : > { %607 = vst [vmem:[%s5214_s17 + $0xc0] sm:$0xff] %v606_v24  ;;  %609 = vst [vmem:[%s5214_s17 + $0xc8] sm:$0xff] %v608_v25  ;;  %v612_v27 = vld [vmem:[%s5209_s15 + $0x158] sm:$0xff]  ;;  %v614_v28 = vld [vmem:[%s5209_s15 + $0x160] sm:$0xff] }
  0x3d   : > { %611 = vst [vmem:[%s5214_s17 + $0xd0] sm:$0xff] %v610_v26  ;;  %v616_v29 = vld [vmem:[%s5209_s15 + $0x168] sm:$0xff]  ;;  %613 = vst [vmem:[%s5214_s17 + $0xd8] sm:$0xff] %v612_v27  ;;  %v618_v30 = vld [vmem:[%s5209_s15 + $0x170] sm:$0xff] }
  0x3e   : > { %615 = vst [vmem:[%s5214_s17 + $0xe0] sm:$0xff] %v614_v28  ;;  %617 = vst [vmem:[%s5214_s17 + $0xe8] sm:$0xff] %v616_v29  ;;  %v620_v31 = vld [vmem:[%s5209_s15 + $0x178] sm:$0xff]  ;;  %v622_v32 = vld [vmem:[%s5209_s15 + $0x200] sm:$0xff] }
  0x3f   : > { %619 = vst [vmem:[%s5214_s17 + $0xf0] sm:$0xff] %v618_v30  ;;  %621 = vst [vmem:[%s5214_s17 + $0xf8] sm:$0xff] %v620_v31  ;;  %v624_v33 = vld [vmem:[%s5209_s15 + $0x208] sm:$0xff]  ;;  %v626_v34 = vld [vmem:[%s5209_s15 + $0x210] sm:$0xff] }
  0x40   : > { %623 = vst [vmem:[%s5214_s17 + $0x100] sm:$0xff] %v622_v32  ;;  %v628_v35 = vld [vmem:[%s5209_s15 + $0x218] sm:$0xff]  ;;  %625 = vst [vmem:[%s5214_s17 + $0x108] sm:$0xff] %v624_v33  ;;  %v630_v36 = vld [vmem:[%s5209_s15 + $0x220] sm:$0xff] }
  0x41   : > { %627 = vst [vmem:[%s5214_s17 + $0x110] sm:$0xff] %v626_v34  ;;  %629 = vst [vmem:[%s5214_s17 + $0x118] sm:$0xff] %v628_v35  ;;  %v632_v37 = vld [vmem:[%s5209_s15 + $0x228] sm:$0xff]  ;;  %v634_v38 = vld [vmem:[%s5209_s15 + $0x230] sm:$0xff] }
  0x42   : > { %631 = vst [vmem:[%s5214_s17 + $0x120] sm:$0xff] %v630_v36  ;;  %633 = vst [vmem:[%s5214_s17 + $0x128] sm:$0xff] %v632_v37  ;;  %v636_v39 = vld [vmem:[%s5209_s15 + $0x238] sm:$0xff]  ;;  %v638_v40 = vld [vmem:[%s5209_s15 + $0x240] sm:$0xff] }
  0x43   : > { %635 = vst [vmem:[%s5214_s17 + $0x130] sm:$0xff] %v634_v38  ;;  %v640_v41 = vld [vmem:[%s5209_s15 + $0x248] sm:$0xff]  ;;  %637 = vst [vmem:[%s5214_s17 + $0x138] sm:$0xff] %v636_v39  ;;  %v642_v42 = vld [vmem:[%s5209_s15 + $0x250] sm:$0xff] }
  0x44   : > { %639 = vst [vmem:[%s5214_s17 + $0x140] sm:$0xff] %v638_v40  ;;  %641 = vst [vmem:[%s5214_s17 + $0x148] sm:$0xff] %v640_v41  ;;  %v644_v43 = vld [vmem:[%s5209_s15 + $0x258] sm:$0xff]  ;;  %v646_v44 = vld [vmem:[%s5209_s15 + $0x260] sm:$0xff] }
  0x45   : > { %643 = vst [vmem:[%s5214_s17 + $0x150] sm:$0xff] %v642_v42  ;;  %645 = vst [vmem:[%s5214_s17 + $0x158] sm:$0xff] %v644_v43  ;;  %v648_v45 = vld [vmem:[%s5209_s15 + $0x268] sm:$0xff]  ;;  %v650_v46 = vld [vmem:[%s5209_s15 + $0x270] sm:$0xff] }
  0x46   : > { %647 = vst [vmem:[%s5214_s17 + $0x160] sm:$0xff] %v646_v44  ;;  %v652_v47 = vld [vmem:[%s5209_s15 + $0x278] sm:$0xff]  ;;  %649 = vst [vmem:[%s5214_s17 + $0x168] sm:$0xff] %v648_v45  ;;  %v654_v48 = vld [vmem:[%s5209_s15 + $0x300] sm:$0xff] }
  0x47   : > { %651 = vst [vmem:[%s5214_s17 + $0x170] sm:$0xff] %v650_v46  ;;  %653 = vst [vmem:[%s5214_s17 + $0x178] sm:$0xff] %v652_v47  ;;  %v656_v49 = vld [vmem:[%s5209_s15 + $0x308] sm:$0xff]  ;;  %v658_v50 = vld [vmem:[%s5209_s15 + $0x310] sm:$0xff] }
  0x48   : > { %655 = vst [vmem:[%s5214_s17 + $0x180] sm:$0xff] %v654_v48  ;;  %657 = vst [vmem:[%s5214_s17 + $0x188] sm:$0xff] %v656_v49  ;;  %v660_v51 = vld [vmem:[%s5209_s15 + $0x318] sm:$0xff]  ;;  %v662_v52 = vld [vmem:[%s5209_s15 + $0x320] sm:$0xff] }
  0x49   : > { %659 = vst [vmem:[%s5214_s17 + $0x190] sm:$0xff] %v658_v50  ;;  %v664_v53 = vld [vmem:[%s5209_s15 + $0x328] sm:$0xff]  ;;  %661 = vst [vmem:[%s5214_s17 + $0x198] sm:$0xff] %v660_v51  ;;  %v666_v54 = vld [vmem:[%s5209_s15 + $0x330] sm:$0xff] }
  0x4a   : > { %663 = vst [vmem:[%s5214_s17 + $0x1a0] sm:$0xff] %v662_v52  ;;  %665 = vst [vmem:[%s5214_s17 + $0x1a8] sm:$0xff] %v664_v53  ;;  %v668_v55 = vld [vmem:[%s5209_s15 + $0x338] sm:$0xff]  ;;  %v670_v56 = vld [vmem:[%s5209_s15 + $0x340] sm:$0xff] }
  0x4b   : > { %667 = vst [vmem:[%s5214_s17 + $0x1b0] sm:$0xff] %v666_v54  ;;  %669 = vst [vmem:[%s5214_s17 + $0x1b8] sm:$0xff] %v668_v55  ;;  %v672_v57 = vld [vmem:[%s5209_s15 + $0x348] sm:$0xff]  ;;  %v674_v58 = vld [vmem:[%s5209_s15 + $0x350] sm:$0xff] }
  0x4c   : > { %671 = vst [vmem:[%s5214_s17 + $0x1c0] sm:$0xff] %v670_v56  ;;  %v676_v59 = vld [vmem:[%s5209_s15 + $0x358] sm:$0xff]  ;;  %673 = vst [vmem:[%s5214_s17 + $0x1c8] sm:$0xff] %v672_v57  ;;  %v678_v60 = vld [vmem:[%s5209_s15 + $0x360] sm:$0xff] }
  0x4d   : > { %675 = vst [vmem:[%s5214_s17 + $0x1d0] sm:$0xff] %v674_v58  ;;  %677 = vst [vmem:[%s5214_s17 + $0x1d8] sm:$0xff] %v676_v59  ;;  %v680_v61 = vld [vmem:[%s5209_s15 + $0x368] sm:$0xff]  ;;  %v682_v62 = vld [vmem:[%s5209_s15 + $0x370] sm:$0xff] }
  0x4e   : > { %679 = vst [vmem:[%s5214_s17 + $0x1e0] sm:$0xff] %v678_v60  ;;  %681 = vst [vmem:[%s5214_s17 + $0x1e8] sm:$0xff] %v680_v61  ;;  %v684_v63 = vld [vmem:[%s5209_s15 + $0x378] sm:$0xff]  ;;  %v686_v0 = vld [vmem:[%s5209_s15 + $0x400] sm:$0xff] }
  0x4f   : > { %683 = vst [vmem:[%s5214_s17 + $0x1f0] sm:$0xff] %v682_v62  ;;  %v688_v1 = vld [vmem:[%s5209_s15 + $0x408] sm:$0xff]  ;;  %685 = vst [vmem:[%s5214_s17 + $0x1f8] sm:$0xff] %v684_v63  ;;  %v690_v2 = vld [vmem:[%s5209_s15 + $0x410] sm:$0xff] }
  0x50   : > { %687 = vst [vmem:[%s5214_s17 + $0x200] sm:$0xff] %v686_v0  ;;  %689 = vst [vmem:[%s5214_s17 + $0x208] sm:$0xff] %v688_v1  ;;  %v692_v3 = vld [vmem:[%s5209_s15 + $0x418] sm:$0xff]  ;;  %v694_v4 = vld [vmem:[%s5209_s15 + $0x420] sm:$0xff] }
  0x51   : > { %691 = vst [vmem:[%s5214_s17 + $0x210] sm:$0xff] %v690_v2  ;;  %693 = vst [vmem:[%s5214_s17 + $0x218] sm:$0xff] %v692_v3  ;;  %v696_v5 = vld [vmem:[%s5209_s15 + $0x428] sm:$0xff]  ;;  %v698_v6 = vld [vmem:[%s5209_s15 + $0x430] sm:$0xff] }
  0x52   : > { %695 = vst [vmem:[%s5214_s17 + $0x220] sm:$0xff] %v694_v4  ;;  %v700_v7 = vld [vmem:[%s5209_s15 + $0x438] sm:$0xff]  ;;  %697 = vst [vmem:[%s5214_s17 + $0x228] sm:$0xff] %v696_v5  ;;  %v702_v8 = vld [vmem:[%s5209_s15 + $0x440] sm:$0xff] }
  0x53   : > { %699 = vst [vmem:[%s5214_s17 + $0x230] sm:$0xff] %v698_v6  ;;  %701 = vst [vmem:[%s5214_s17 + $0x238] sm:$0xff] %v700_v7  ;;  %v704_v9 = vld [vmem:[%s5209_s15 + $0x448] sm:$0xff]  ;;  %v706_v10 = vld [vmem:[%s5209_s15 + $0x450] sm:$0xff] }
  0x54   : > { %703 = vst [vmem:[%s5214_s17 + $0x240] sm:$0xff] %v702_v8  ;;  %705 = vst [vmem:[%s5214_s17 + $0x248] sm:$0xff] %v704_v9  ;;  %v708_v11 = vld [vmem:[%s5209_s15 + $0x458] sm:$0xff]  ;;  %v710_v12 = vld [vmem:[%s5209_s15 + $0x460] sm:$0xff] }
  0x55   : > { %707 = vst [vmem:[%s5214_s17 + $0x250] sm:$0xff] %v706_v10  ;;  %v712_v13 = vld [vmem:[%s5209_s15 + $0x468] sm:$0xff]  ;;  %709 = vst [vmem:[%s5214_s17 + $0x258] sm:$0xff] %v708_v11  ;;  %v714_v14 = vld [vmem:[%s5209_s15 + $0x470] sm:$0xff] }
  0x56   : > { %711 = vst [vmem:[%s5214_s17 + $0x260] sm:$0xff] %v710_v12  ;;  %713 = vst [vmem:[%s5214_s17 + $0x268] sm:$0xff] %v712_v13  ;;  %v716_v15 = vld [vmem:[%s5209_s15 + $0x478] sm:$0xff]  ;;  %v718_v16 = vld [vmem:[%s5209_s15 + $0x500] sm:$0xff] }
  0x57   : > { %715 = vst [vmem:[%s5214_s17 + $0x270] sm:$0xff] %v714_v14  ;;  %717 = vst [vmem:[%s5214_s17 + $0x278] sm:$0xff] %v716_v15  ;;  %v720_v17 = vld [vmem:[%s5209_s15 + $0x508] sm:$0xff]  ;;  %v722_v18 = vld [vmem:[%s5209_s15 + $0x510] sm:$0xff] }
  0x58   : > { %719 = vst [vmem:[%s5214_s17 + $0x280] sm:$0xff] %v718_v16  ;;  %v724_v19 = vld [vmem:[%s5209_s15 + $0x518] sm:$0xff]  ;;  %721 = vst [vmem:[%s5214_s17 + $0x288] sm:$0xff] %v720_v17  ;;  %v726_v20 = vld [vmem:[%s5209_s15 + $0x520] sm:$0xff] }
  0x59   : > { %723 = vst [vmem:[%s5214_s17 + $0x290] sm:$0xff] %v722_v18  ;;  %725 = vst [vmem:[%s5214_s17 + $0x298] sm:$0xff] %v724_v19  ;;  %v728_v21 = vld [vmem:[%s5209_s15 + $0x528] sm:$0xff]  ;;  %v730_v22 = vld [vmem:[%s5209_s15 + $0x530] sm:$0xff] }
  0x5a   : > { %727 = vst [vmem:[%s5214_s17 + $0x2a0] sm:$0xff] %v726_v20  ;;  %729 = vst [vmem:[%s5214_s17 + $0x2a8] sm:$0xff] %v728_v21  ;;  %v732_v23 = vld [vmem:[%s5209_s15 + $0x538] sm:$0xff]  ;;  %v734_v24 = vld [vmem:[%s5209_s15 + $0x540] sm:$0xff] }
  0x5b   : > { %731 = vst [vmem:[%s5214_s17 + $0x2b0] sm:$0xff] %v730_v22  ;;  %v736_v25 = vld [vmem:[%s5209_s15 + $0x548] sm:$0xff]  ;;  %733 = vst [vmem:[%s5214_s17 + $0x2b8] sm:$0xff] %v732_v23  ;;  %v738_v26 = vld [vmem:[%s5209_s15 + $0x550] sm:$0xff] }
  0x5c   : > { %735 = vst [vmem:[%s5214_s17 + $0x2c0] sm:$0xff] %v734_v24  ;;  %737 = vst [vmem:[%s5214_s17 + $0x2c8] sm:$0xff] %v736_v25  ;;  %v740_v27 = vld [vmem:[%s5209_s15 + $0x558] sm:$0xff]  ;;  %v742_v28 = vld [vmem:[%s5209_s15 + $0x560] sm:$0xff] }
  0x5d   : > { %739 = vst [vmem:[%s5214_s17 + $0x2d0] sm:$0xff] %v738_v26  ;;  %741 = vst [vmem:[%s5214_s17 + $0x2d8] sm:$0xff] %v740_v27  ;;  %v744_v29 = vld [vmem:[%s5209_s15 + $0x568] sm:$0xff]  ;;  %v746_v30 = vld [vmem:[%s5209_s15 + $0x570] sm:$0xff] }
  0x5e   : > { %743 = vst [vmem:[%s5214_s17 + $0x2e0] sm:$0xff] %v742_v28  ;;  %v748_v31 = vld [vmem:[%s5209_s15 + $0x578] sm:$0xff]  ;;  %745 = vst [vmem:[%s5214_s17 + $0x2e8] sm:$0xff] %v744_v29  ;;  %v750_v32 = vld [vmem:[%s5209_s15 + $0x600] sm:$0xff] }
  0x5f   : > { %747 = vst [vmem:[%s5214_s17 + $0x2f0] sm:$0xff] %v746_v30  ;;  %749 = vst [vmem:[%s5214_s17 + $0x2f8] sm:$0xff] %v748_v31  ;;  %v752_v33 = vld [vmem:[%s5209_s15 + $0x608] sm:$0xff]  ;;  %v754_v34 = vld [vmem:[%s5209_s15 + $0x610] sm:$0xff] }
  0x60   : > { %751 = vst [vmem:[%s5214_s17 + $0x300] sm:$0xff] %v750_v32  ;;  %753 = vst [vmem:[%s5214_s17 + $0x308] sm:$0xff] %v752_v33  ;;  %v756_v35 = vld [vmem:[%s5209_s15 + $0x618] sm:$0xff]  ;;  %v758_v36 = vld [vmem:[%s5209_s15 + $0x620] sm:$0xff] }
  0x61   : > { %755 = vst [vmem:[%s5214_s17 + $0x310] sm:$0xff] %v754_v34  ;;  %v760_v37 = vld [vmem:[%s5209_s15 + $0x628] sm:$0xff]  ;;  %757 = vst [vmem:[%s5214_s17 + $0x318] sm:$0xff] %v756_v35  ;;  %v762_v38 = vld [vmem:[%s5209_s15 + $0x630] sm:$0xff] }
  0x62   : > { %759 = vst [vmem:[%s5214_s17 + $0x320] sm:$0xff] %v758_v36  ;;  %761 = vst [vmem:[%s5214_s17 + $0x328] sm:$0xff] %v760_v37  ;;  %v764_v39 = vld [vmem:[%s5209_s15 + $0x638] sm:$0xff]  ;;  %v766_v40 = vld [vmem:[%s5209_s15 + $0x640] sm:$0xff] }
  0x63   : > { %763 = vst [vmem:[%s5214_s17 + $0x330] sm:$0xff] %v762_v38  ;;  %765 = vst [vmem:[%s5214_s17 + $0x338] sm:$0xff] %v764_v39  ;;  %v768_v41 = vld [vmem:[%s5209_s15 + $0x648] sm:$0xff]  ;;  %v770_v42 = vld [vmem:[%s5209_s15 + $0x650] sm:$0xff] }
  0x64   : > { %767 = vst [vmem:[%s5214_s17 + $0x340] sm:$0xff] %v766_v40  ;;  %v772_v43 = vld [vmem:[%s5209_s15 + $0x658] sm:$0xff]  ;;  %769 = vst [vmem:[%s5214_s17 + $0x348] sm:$0xff] %v768_v41  ;;  %v774_v44 = vld [vmem:[%s5209_s15 + $0x660] sm:$0xff] }
  0x65   : > { %771 = vst [vmem:[%s5214_s17 + $0x350] sm:$0xff] %v770_v42  ;;  %773 = vst [vmem:[%s5214_s17 + $0x358] sm:$0xff] %v772_v43  ;;  %v776_v45 = vld [vmem:[%s5209_s15 + $0x668] sm:$0xff]  ;;  %v778_v46 = vld [vmem:[%s5209_s15 + $0x670] sm:$0xff] }
  0x66   : > { %775 = vst [vmem:[%s5214_s17 + $0x360] sm:$0xff] %v774_v44  ;;  %777 = vst [vmem:[%s5214_s17 + $0x368] sm:$0xff] %v776_v45  ;;  %v780_v47 = vld [vmem:[%s5209_s15 + $0x678] sm:$0xff]  ;;  %v782_v48 = vld [vmem:[%s5209_s15 + $0x700] sm:$0xff] }
  0x67   : > { %779 = vst [vmem:[%s5214_s17 + $0x370] sm:$0xff] %v778_v46  ;;  %v784_v49 = vld [vmem:[%s5209_s15 + $0x708] sm:$0xff]  ;;  %781 = vst [vmem:[%s5214_s17 + $0x378] sm:$0xff] %v780_v47  ;;  %v786_v50 = vld [vmem:[%s5209_s15 + $0x710] sm:$0xff] }
  0x68   : > { %783 = vst [vmem:[%s5214_s17 + $0x380] sm:$0xff] %v782_v48  ;;  %785 = vst [vmem:[%s5214_s17 + $0x388] sm:$0xff] %v784_v49  ;;  %v788_v51 = vld [vmem:[%s5209_s15 + $0x718] sm:$0xff]  ;;  %v790_v52 = vld [vmem:[%s5209_s15 + $0x720] sm:$0xff] }
  0x69   : > { %787 = vst [vmem:[%s5214_s17 + $0x390] sm:$0xff] %v786_v50  ;;  %789 = vst [vmem:[%s5214_s17 + $0x398] sm:$0xff] %v788_v51  ;;  %v792_v53 = vld [vmem:[%s5209_s15 + $0x728] sm:$0xff]  ;;  %v794_v54 = vld [vmem:[%s5209_s15 + $0x730] sm:$0xff] }
  0x6a   : > { %791 = vst [vmem:[%s5214_s17 + $0x3a0] sm:$0xff] %v790_v52  ;;  %v796_v55 = vld [vmem:[%s5209_s15 + $0x738] sm:$0xff]  ;;  %793 = vst [vmem:[%s5214_s17 + $0x3a8] sm:$0xff] %v792_v53  ;;  %v798_v56 = vld [vmem:[%s5209_s15 + $0x740] sm:$0xff] }
  0x6b   : > { %795 = vst [vmem:[%s5214_s17 + $0x3b0] sm:$0xff] %v794_v54  ;;  %797 = vst [vmem:[%s5214_s17 + $0x3b8] sm:$0xff] %v796_v55  ;;  %v800_v57 = vld [vmem:[%s5209_s15 + $0x748] sm:$0xff]  ;;  %v802_v58 = vld [vmem:[%s5209_s15 + $0x750] sm:$0xff] }
  0x6c   : > { %799 = vst [vmem:[%s5214_s17 + $0x3c0] sm:$0xff] %v798_v56  ;;  %801 = vst [vmem:[%s5214_s17 + $0x3c8] sm:$0xff] %v800_v57  ;;  %v804_v59 = vld [vmem:[%s5209_s15 + $0x758] sm:$0xff]  ;;  %v806_v60 = vld [vmem:[%s5209_s15 + $0x760] sm:$0xff] }
  0x6d   : > { %803 = vst [vmem:[%s5214_s17 + $0x3d0] sm:$0xff] %v802_v58  ;;  %v808_v61 = vld [vmem:[%s5209_s15 + $0x768] sm:$0xff]  ;;  %805 = vst [vmem:[%s5214_s17 + $0x3d8] sm:$0xff] %v804_v59  ;;  %v810_v62 = vld [vmem:[%s5209_s15 + $0x770] sm:$0xff] }
  0x6e   : > { %807 = vst [vmem:[%s5214_s17 + $0x3e0] sm:$0xff] %v806_v60  ;;  %809 = vst [vmem:[%s5214_s17 + $0x3e8] sm:$0xff] %v808_v61  ;;  %v812_v63 = vld [vmem:[%s5209_s15 + $0x778] sm:$0xff] }
  0x6f   : > { %811 = vst [vmem:[%s5214_s17 + $0x3f0] sm:$0xff] %v810_v62  ;;  %813 = vst [vmem:[%s5214_s17 + $0x3f8] sm:$0xff] %v812_v63 }
  0x70 PF: > { %p3258_p0 = scmp.ge.s32.totalorder %s5052_s10, 1  ;;  %p829_p1 = scmp.lt.s32.totalorder %s5052_s10, 5 }
  0x72   : > { %p830_p2 = pnand %p3258_p0, %p829_p1 }
  0x74   : > { %833 = sbr.rel (%p830_p2) target bundleno = 1719 (0x6b7), region = 78 }
  0x7b   : > { %s836_s13 = sand.u32 1, %s5028_s27   ;;  %s5473_s14 = sand.u32 1, %s5020_s25  }
  0x7c   : > { %s3259_s22 = sshll.u32 %s836_s13, 10  ;;  %s3260_s12 = sshll.u32 %s5473_s14, 3 }
  0x7d   : > { %s3261_s16 = sshll.u32 %s5473_s14, 4  ;;  %p884_p3 = scmp.lt.s32.totalorder %s5040_s30, 1 }
  0x7e   : > { %p892_p4 = scmp.lt.s32.totalorder %s5036_s29, 1  ;;  %s5491_s13 = scalar_lea.vmem [#allocation7], %s3259_s22 }
  0x7f   : > { %s885_s20 = scalar_select %p884_p3, %s5040_s30, 1 }
  0x80   : > { %s893_s21 = scalar_select %p892_p4, %s5036_s29, 1 }
  0x81   : > { %s3262_s18 = sshll.u32 %s885_s20, 3  ;;  %s3263_s15 = sshll.u32 %s885_s20, 1 }
  0x82   : > { %s5484_s9 = scalar_lea.vmem %s6434_s0, %s3262_s18  ;;  %s895_s8 = sadd.s32 %s3263_s15, %s893_s21 }
  0x83   : > { %s3264_s27 = sshll.u32 %s895_s8, 3  ;;  %s5493_s26 = scalar_lea.vmem [#allocation8], %s3260_s12 }
  0x84   : > { %s5489_s23 = scalar_lea.vmem %s6436_s2, %s3264_s27  ;;  %s5495_s25 = scalar_lea.vmem [#allocation10], %s3261_s16 }
  0x85   : > { %p3265_p5 = scmp.ne.s32.totalorder %s5036_s29, 0 }
  0x86   : > { %v903_v0 = vld [vmem:[%s6437_s3] sm:$0xff] (!%p3265_p5)  ;;  %v904_v1 = vld [vmem:[%s6437_s3 + $0x8] sm:$0xff] (!%p3265_p5)  ;;  %v905_v2 = vld [vmem:[%s6437_s3 + $0x10] sm:$0xff] (!%p3265_p5)  ;;  %v5054_v3 = vmov (!%p3265_p5), 0.0|0.0   ;;  %vm5055_vm0 = vmmov (!%p3265_p5), 0   ;;  %v5056_v6 = vmov (!%p3265_p5), 0.0  }
  0x87   : > { %901 = sbr.rel (%p3265_p5) target bundleno = 357 (0x165), region = 86  ;;  %4303 = vmatprep.subr.bf16.mxu0 (!%p3265_p5), %v5054_v3  ;;  %v4304_v4 = vpack.c.bf16 (!%p3265_p5), %v904_v1, %v903_v0  ;;  %v906_v5 = vld [vmem:[%s6437_s3 + $0x18] sm:$0xff] (!%p3265_p5)  ;;  %3714 = vmatprep.mubr.msk.f32.mxu0 (!%p3265_p5), %vm5055_vm0, %v5056_v6  ;;  %vm983_vm1 = vcmask (!%p3265_p5), 7168   ;;  %vm987_vm2 = vcmask (!%p3265_p5), 15360   ;;  %v5057_v7 = vmov (!%p3265_p5), -1e+30  }
  0x88   : > { %984 = vst.msk [vmem:[#allocation3] sm:$0xff] (!%p3265_p5), %vm983_vm1, %v5057_v7  ;;  %985 = vst.msk [vmem:[#allocation4] sm:$0xff] (!%p3265_p5), %vm983_vm1, %v5056_v6  ;;  %v4307_v8 = vpack.c.bf16 (!%p3265_p5), %v906_v5, %v905_v2  ;;  %v902_v9 = vld [vmem:[%s5484_s9] sm:$0xff] (!%p3265_p5)  ;;  %vm907_vm3 = vcmask (!%p3265_p5), 261120   ;;  %vm981_vm4 = vcmask (!%p3265_p5), 392192  }
  0x89   : > { %988 = vst.msk [vmem:[#allocation6] sm:$0xff] (!%p3265_p5), %vm987_vm2, %v5057_v7  ;;  %4305 = vmatpush3.bf16.msra.mxu0 (!%p3265_p5), %v4304_v4 }
  0x8a   : > { %4306 = vmatprep.subr.bf16.mxu0 (!%p3265_p5), %v5054_v3  ;;  %986 = vst.msk [vmem:[#allocation5] sm:$0xff] (!%p3265_p5), %vm981_vm4, %v5056_v6 }
  0x8d   : > { %4308 = vmatpush3.bf16.msra.mxu0 (!%p3265_p5), %v4307_v8 }
  0x90   : > { %3715 = vmatmul.mubr.msk.f32.vlgmr.msra.gmra.mrb[0].mxu0 %vm907_vm3, %v902_v9 }
 0x163   : > { %v977_v10 = vpop.f32.mrb[0].mxu0 }
 0x164   : > { %982 = vst.msk [vmem:[#allocation2] sm:$0xff] %vm981_vm4, %v977_v10  ;;  %v3716_v11 = vpop.f32.mrb[1].mxu0 }
 0x165 PF: > { %v989_v12 = vld [vmem:[%s5491_s13] sm:$0xff]  ;;  %v990_v13 = vld [vmem:[%s5491_s13 + $0x8] sm:$0xff]  ;;  %vm1168_vm5 = vcmask 392192   ;;  %v6463_v15 = vmov 0.0|0.0   ;;  %vm5059_vm7 = vmmov 0   ;;  %v6451_v20 = vmov 0.0  }
 0x166   : > { %v1005_v14 = vld [vmem:[%s5491_s13 + $0x80] sm:$0xff]  ;;  %4309 = vmatprep.subr.bf16.mxu0 %v6463_v15  ;;  %4341 = vmatprep.subr.bf16.mxu1 %v6463_v15  ;;  %v5516_v16 = vpack.c.bf16 %v990_v13, %v989_v12  ;;  %vm5520_vm6 = vmpackc.low %vm1168_vm5, %vm1168_vm5  ;;  %v1006_v18 = vld [vmem:[%s5491_s13 + $0x88] sm:$0xff]  ;;  %v5061_v23 = vmov 1966171168   ;;  %v6450_v25 = vlaneseq  ;;  %v6508_v17 = vmov 0.0   ;;  %p3405_p6 = scmp.ne.s32.totalorder %s5036_s29, 1 }
 0x167   : > { %v5525_v19 = vpack.c.bf16 %v1006_v18, %v1005_v14  ;;  %3749 = vmatprep.mubr.msk.f32.mxu0 %vm5059_vm7, %v6451_v20  ;;  %3784 = vmatprep.mubr.msk.f32.mxu1 %vm5059_vm7, %v6451_v20  ;;  %v991_v21 = vld [vmem:[%s5491_s13 + $0x10] sm:$0xff]  ;;  %v992_v22 = vld [vmem:[%s5491_s13 + $0x18] sm:$0xff]  ;;  %v1121_v24 = vunpack.c.l.s4 %v5061_v23  ;;  %v993_v33 = vld [vmem:[%s5491_s13 + $0x20] sm:$0xff]  ;;  %vm2164_vm8 = vcmask 1041409   ;;  %vm2167_vm9 = vcmask 1042434  }
 0x168   : > { %4312 = vmatpush3.bf16.xpose.msk.msra.mxu0 %vm5520_vm6, %v5516_v16  ;;  %v1007_v26 = vld [vmem:[%s5491_s13 + $0x90] sm:$0xff]  ;;  %v1008_v27 = vld [vmem:[%s5491_s13 + $0x98] sm:$0xff]  ;;  %v5543_v28 = vpack.c.bf16 %v992_v22, %v991_v21  ;;  %v1124_v31 = vshrl.u32 %v6450_v25, 7  ;;  %v994_v34 = vld [vmem:[%s5491_s13 + $0x28] sm:$0xff]  ;;  %vm2170_vm10 = vcmask 1043459   ;;  %vm2173_vm11 = vcmask 1044484  }
 0x169   : > { %4344 = vmatpush3.bf16.xpose.msk.msra.mxu1 %vm5520_vm6, %v5525_v19  ;;  %4313 = vmatprep.subr.bf16.mxu0 %v6463_v15  ;;  %v5545_v29 = vpack.c.bf16 %v1008_v27, %v1007_v26  ;;  %v1122_v30 = vunpack.c.0.s8 %v1121_v24  ;;  %v1009_v37 = vld [vmem:[%s5491_s13 + $0xa0] sm:$0xff]  ;;  %v1010_v38 = vld [vmem:[%s5491_s13 + $0xa8] sm:$0xff]  ;;  %v5565_v40 = vpack.c.bf16 %v994_v34, %v993_v33  ;;  %v995_v42 = vld [vmem:[%s5491_s13 + $0x30] sm:$0xff]  ;;  %vm2176_vm12 = vcmask 1045509  }
 0x16a   : > { %4345 = vmatprep.subr.bf16.mxu1 %v6463_v15  ;;  %v5567_v41 = vpack.c.bf16 %v1010_v38, %v1009_v37  ;;  %v996_v43 = vld [vmem:[%s5491_s13 + $0x38] sm:$0xff]  ;;  %v1011_v44 = vld [vmem:[%s5491_s13 + $0xb0] sm:$0xff]  ;;  %v997_v48 = vld [vmem:[%s5491_s13 + $0x40] sm:$0xff]  ;;  %vm2179_vm13 = vcmask 1046534   ;;  %vm2182_vm14 = vcmask 1047559   ;;  %vm2262_vm15 = vcmask 7168  }
 0x16b   : > { %v1117_v32 = vld [vmem:[#allocation2] sm:$0xff]  ;;  %v5557_v36 = vsub.s32 %v1122_v30, %v1124_v31  ;;  %v5581_v46 = vpack.c.bf16 %v996_v43, %v995_v42  ;;  %v998_v49 = vld [vmem:[%s5491_s13 + $0x48] sm:$0xff]  ;;  %v1013_v50 = vld [vmem:[%s5491_s13 + $0xc0] sm:$0xff]  ;;  %vm2863_vm1 = vcmask 15360   ;;  %vm5065_vm2 = vmmov (!%p3405_p6), 0  }
 0x16c   : > { %v1119_v35 = vcombine.high %v1117_v32, %v1117_v32  ;;  %v1012_v45 = vld [vmem:[%s5491_s13 + $0xb8] sm:$0xff]  ;;  %v1014_v51 = vld [vmem:[%s5491_s13 + $0xc8] sm:$0xff]  ;;  %v5597_v52 = vpack.c.bf16 %v998_v49, %v997_v48  ;;  %v999_v54 = vld [vmem:[%s5491_s13 + $0x50] sm:$0xff]  ;;  %vm2924_vm3 = vcmask (!%p3405_p6), 261120  }
 0x16d   : > { %v5583_v47 = vpack.c.bf16 %v1012_v45, %v1011_v44  ;;  %v5599_v53 = vpack.c.bf16 %v1014_v51, %v1013_v50  ;;  %v1000_v55 = vld [vmem:[%s5491_s13 + $0x58] sm:$0xff]  ;;  %v1015_v56 = vld [vmem:[%s5491_s13 + $0xd0] sm:$0xff]  ;;  %v1001_v60 = vld [vmem:[%s5491_s13 + $0x60] sm:$0xff]  ;;  %v1126_v7 = vrot.slane %v1117_v32, %v5557_v36 }
 0x16e   : > { %v5563_v39 = vrot.slane %v1119_v35, %v5557_v36  ;;  %v1016_v57 = vld [vmem:[%s5491_s13 + $0xd8] sm:$0xff]  ;;  %v5613_v58 = vpack.c.bf16 %v1000_v55, %v999_v54  ;;  %v1002_v61 = vld [vmem:[%s5491_s13 + $0x68] sm:$0xff]  ;;  %v1017_v62 = vld [vmem:[%s5491_s13 + $0xe0] sm:$0xff] }
 0x16f   : > { %v5615_v59 = vpack.c.bf16 %v1016_v57, %v1015_v56  ;;  %v1018_v63 = vld [vmem:[%s5491_s13 + $0xe8] sm:$0xff]  ;;  %v5629_v0 = vpack.c.bf16 %v1002_v61, %v1001_v60  ;;  %v1003_v2 = vld [vmem:[%s5491_s13 + $0x70] sm:$0xff]  ;;  %v1004_v3 = vld [vmem:[%s5491_s13 + $0x78] sm:$0xff]  ;;  %v1134_v9 = vcombine.high %v1126_v7, %v1126_v7  ;;  %v5667_v18 = vrot.slane %v1126_v7, %v5557_v36 }
 0x170   : > { %4316 = vmatpush3.bf16.xpose.msk.msra.mxu0 %vm5520_vm6, %v5543_v28  ;;  %v5631_v1 = vpack.c.bf16 %v1018_v63, %v1017_v62  ;;  %v1019_v4 = vld [vmem:[%s5491_s13 + $0xf0] sm:$0xff]  ;;  %v1020_v5 = vld [vmem:[%s5491_s13 + $0xf8] sm:$0xff]  ;;  %v5645_v6 = vpack.c.bf16 %v1004_v3, %v1003_v2  ;;  %v1021_v10 = vld [vmem:[%s5491_s13 + $0x100] sm:$0xff]  ;;  %v5661_v12 = vrot.slane %v5563_v39, %v5557_v36  ;;  %v1135_v24 = vcombine.high %v5563_v39, %v5563_v39 }
 0x171   : > { %4348 = vmatpush3.bf16.xpose.msk.msra.mxu1 %vm5520_vm6, %v5545_v29  ;;  %4317 = vmatprep.subr.bf16.mxu0 %v6463_v15  ;;  %v5648_v8 = vpack.c.bf16 %v1020_v5, %v1019_v4  ;;  %v1022_v11 = vld [vmem:[%s5491_s13 + $0x108] sm:$0xff]  ;;  %v1037_v13 = vld [vmem:[%s5491_s13 + $0x180] sm:$0xff]  ;;  %v5670_v21 = vrot.slane %v1134_v9, %v5557_v36  ;;  %v1023_v27 = vld [vmem:[%s5491_s13 + $0x110] sm:$0xff] }
 0x172   : > { %4349 = vmatprep.subr.bf16.mxu1 %v6463_v15  ;;  %v1038_v14 = vld [vmem:[%s5491_s13 + $0x188] sm:$0xff]  ;;  %v5672_v22 = vpack.c.bf16 %v1022_v11, %v1021_v10  ;;  %v5681_v26 = vrot.slane %v1135_v24, %v5557_v36  ;;  %v1024_v30 = vld [vmem:[%s5491_s13 + $0x118] sm:$0xff]  ;;  %v1039_v31 = vld [vmem:[%s5491_s13 + $0x190] sm:$0xff] }
 0x173   : > { %v5674_v23 = vpack.c.bf16 %v1038_v14, %v1037_v13  ;;  %v1040_v32 = vld [vmem:[%s5491_s13 + $0x198] sm:$0xff]  ;;  %v5701_v33 = vpack.c.bf16 %v1024_v30, %v1023_v27  ;;  %v1025_v35 = vld [vmem:[%s5491_s13 + $0x120] sm:$0xff]  ;;  %v1026_v36 = vld [vmem:[%s5491_s13 + $0x128] sm:$0xff] }
 0x174   : > { %v5703_v34 = vpack.c.bf16 %v1040_v32, %v1039_v31  ;;  %v1041_v37 = vld [vmem:[%s5491_s13 + $0x1a0] sm:$0xff]  ;;  %v1042_v38 = vld [vmem:[%s5491_s13 + $0x1a8] sm:$0xff]  ;;  %v5717_v39 = vpack.c.bf16 %v1026_v36, %v1025_v35  ;;  %v1027_v43 = vld [vmem:[%s5491_s13 + $0x130] sm:$0xff] }
 0x175   : > { %v5719_v42 = vpack.c.bf16 %v1042_v38, %v1041_v37  ;;  %v1028_v44 = vld [vmem:[%s5491_s13 + $0x138] sm:$0xff]  ;;  %v1043_v45 = vld [vmem:[%s5491_s13 + $0x1b0] sm:$0xff]  ;;  %v1029_v51 = vld [vmem:[%s5491_s13 + $0x140] sm:$0xff] }
 0x176   : > { %v1044_v48 = vld [vmem:[%s5491_s13 + $0x1b8] sm:$0xff]  ;;  %v5733_v49 = vpack.c.bf16 %v1028_v44, %v1027_v43  ;;  %v1030_v54 = vld [vmem:[%s5491_s13 + $0x148] sm:$0xff]  ;;  %v1045_v55 = vld [vmem:[%s5491_s13 + $0x1c0] sm:$0xff]  ;;  %v1164_v43 = vcombine.high %v5667_v18, %v5667_v18  ;;  %v1166_v44 = vcombine.high %v5670_v21, %v5670_v21 }
 0x177   : > { %v5735_v50 = vpack.c.bf16 %v1044_v48, %v1043_v45  ;;  %v1046_v56 = vld [vmem:[%s5491_s13 + $0x1c8] sm:$0xff]  ;;  %v5749_v57 = vpack.c.bf16 %v1030_v54, %v1029_v51  ;;  %v1031_v61 = vld [vmem:[%s5491_s13 + $0x150] sm:$0xff]  ;;  %v1032_v62 = vld [vmem:[%s5491_s13 + $0x158] sm:$0xff] }
 0x178   : > { %4320 = vmatpush3.bf16.xpose.msk.msra.mxu0 %vm5520_vm6, %v5565_v40  ;;  %v5751_v60 = vpack.c.bf16 %v1046_v56, %v1045_v55  ;;  %v1047_v63 = vld [vmem:[%s5491_s13 + $0x1d0] sm:$0xff]  ;;  %v1048_v2 = vld [vmem:[%s5491_s13 + $0x1d8] sm:$0xff]  ;;  %v5765_v3 = vpack.c.bf16 %v1032_v62, %v1031_v61  ;;  %v1033_v5 = vld [vmem:[%s5491_s13 + $0x160] sm:$0xff] }
 0x179   : > { %4352 = vmatpush3.bf16.xpose.msk.msra.mxu1 %vm5520_vm6, %v5567_v41  ;;  %4321 = vmatprep.subr.bf16.mxu0 %v6463_v15  ;;  %v5767_v4 = vpack.c.bf16 %v1048_v2, %v1047_v63  ;;  %v1034_v7 = vld [vmem:[%s5491_s13 + $0x168] sm:$0xff]  ;;  %v1049_v9 = vld [vmem:[%s5491_s13 + $0x1e0] sm:$0xff]  ;;  %v1035_v14 = vld [vmem:[%s5491_s13 + $0x170] sm:$0xff] }
 0x17a   : > { %4353 = vmatprep.subr.bf16.mxu1 %v6463_v15  ;;  %v1050_v10 = vld [vmem:[%s5491_s13 + $0x1e8] sm:$0xff]  ;;  %v5781_v11 = vpack.c.bf16 %v1034_v7, %v1033_v5  ;;  %v1036_v24 = vld [vmem:[%s5491_s13 + $0x178] sm:$0xff]  ;;  %v1051_v27 = vld [vmem:[%s5491_s13 + $0x1f0] sm:$0xff] }
 0x17b   : > { %v5783_v13 = vpack.c.bf16 %v1050_v10, %v1049_v9  ;;  %v1052_v30 = vld [vmem:[%s5491_s13 + $0x1f8] sm:$0xff]  ;;  %v5797_v31 = vpack.c.bf16 %v1036_v24, %v1035_v14  ;;  %v1053_v35 = vld [vmem:[%s5491_s13 + $0x200] sm:$0xff]  ;;  %v1054_v36 = vld [vmem:[%s5491_s13 + $0x208] sm:$0xff] }
 0x17c   : > { %v5799_v32 = vpack.c.bf16 %v1052_v30, %v1051_v27  ;;  %v1069_v37 = vld [vmem:[%s5491_s13 + $0x280] sm:$0xff]  ;;  %v1070_v38 = vld [vmem:[%s5491_s13 + $0x288] sm:$0xff]  ;;  %v5817_v45 = vpack.c.bf16 %v1054_v36, %v1053_v35  ;;  %v1071_v51 = vld [vmem:[%s5491_s13 + $0x290] sm:$0xff] }
 0x17d   : > { %v5819_v48 = vpack.c.bf16 %v1070_v38, %v1069_v37  ;;  %v1072_v54 = vld [vmem:[%s5491_s13 + $0x298] sm:$0xff]  ;;  %v1057_v61 = vld [vmem:[%s5491_s13 + $0x220] sm:$0xff]  ;;  %v1058_v62 = vld [vmem:[%s5491_s13 + $0x228] sm:$0xff] }
 0x17e   : > { %v5841_v56 = vpack.c.bf16 %v1072_v54, %v1071_v51  ;;  %v1073_v63 = vld [vmem:[%s5491_s13 + $0x2a0] sm:$0xff]  ;;  %v1074_v2 = vld [vmem:[%s5491_s13 + $0x2a8] sm:$0xff]  ;;  %v5855_v5 = vpack.c.bf16 %v1058_v62, %v1057_v61  ;;  %v1059_v9 = vld [vmem:[%s5491_s13 + $0x230] sm:$0xff] }
 0x17f   : > { %v5857_v7 = vpack.c.bf16 %v1074_v2, %v1073_v63  ;;  %v1060_v10 = vld [vmem:[%s5491_s13 + $0x238] sm:$0xff]  ;;  %v1075_v14 = vld [vmem:[%s5491_s13 + $0x2b0] sm:$0xff]  ;;  %v1061_v35 = vld [vmem:[%s5491_s13 + $0x240] sm:$0xff] }
 0x180   : > { %4324 = vmatpush3.bf16.xpose.msk.msra.mxu0 %vm5520_vm6, %v5581_v46  ;;  %v1076_v24 = vld [vmem:[%s5491_s13 + $0x2b8] sm:$0xff]  ;;  %v5871_v27 = vpack.c.bf16 %v1060_v10, %v1059_v9  ;;  %v1062_v36 = vld [vmem:[%s5491_s13 + $0x248] sm:$0xff]  ;;  %v1077_v37 = vld [vmem:[%s5491_s13 + $0x2c0] sm:$0xff] }
 0x181   : > { %4356 = vmatpush3.bf16.xpose.msk.msra.mxu1 %vm5520_vm6, %v5583_v47  ;;  %4325 = vmatprep.subr.bf16.mxu0 %v6463_v15  ;;  %v5873_v30 = vpack.c.bf16 %v1076_v24, %v1075_v14  ;;  %v1078_v38 = vld [vmem:[%s5491_s13 + $0x2c8] sm:$0xff]  ;;  %v1079_v51 = vld [vmem:[%s5491_s13 + $0x2d0] sm:$0xff]  ;;  %v1080_v54 = vld [vmem:[%s5491_s13 + $0x2d8] sm:$0xff] }
 0x182   : > { %4357 = vmatprep.subr.bf16.mxu1 %v6463_v15  ;;  %v5905_v62 = vpack.c.bf16 %v1080_v54, %v1079_v51  ;;  %v1065_v63 = vld [vmem:[%s5491_s13 + $0x260] sm:$0xff]  ;;  %v1066_v2 = vld [vmem:[%s5491_s13 + $0x268] sm:$0xff]  ;;  %v1091_v25 = vld [vmem:[%s5491_s13 + $0x330] sm:$0xff] }
 0x183   : > { %v1081_v9 = vld [vmem:[%s5491_s13 + $0x2e0] sm:$0xff]  ;;  %v1082_v10 = vld [vmem:[%s5491_s13 + $0x2e8] sm:$0xff]  ;;  %v5919_v14 = vpack.c.bf16 %v1066_v2, %v1065_v63 }
 0x184   : > { %v5921_v24 = vpack.c.bf16 %v1082_v10, %v1081_v9  ;;  %v1085_v51 = vld [vmem:[%s5491_s13 + $0x300] sm:$0xff]  ;;  %v1086_v54 = vld [vmem:[%s5491_s13 + $0x308] sm:$0xff] }
 0x185   : > { %v1101_v63 = vld [vmem:[%s5491_s13 + $0x380] sm:$0xff]  ;;  %v1102_v2 = vld [vmem:[%s5491_s13 + $0x388] sm:$0xff]  ;;  %v5951_v9 = vpack.c.bf16 %v1086_v54, %v1085_v51 }
 0x186   : > { %v5953_v10 = vpack.c.bf16 %v1102_v2, %v1101_v63  ;;  %v1089_v63 = vld [vmem:[%s5491_s13 + $0x320] sm:$0xff]  ;;  %v1090_v2 = vld [vmem:[%s5491_s13 + $0x328] sm:$0xff] }
 0x187   : > { %6492 = vst [vmem:[#allocation26_spill] sm:$0xff] %v5951_v9 }
 0x188   : > { %4328 = vmatpush3.bf16.xpose.msk.msra.mxu0 %vm5520_vm6, %v5597_v52  ;;  %6493 = vst [vmem:[#allocation27_spill] sm:$0xff] %v5953_v10 }
 0x189   : > { %4360 = vmatpush3.bf16.xpose.msk.msra.mxu1 %vm5520_vm6, %v5599_v53  ;;  %4329 = vmatprep.subr.bf16.mxu0 %v6463_v15 }
 0x18a   : > { %4361 = vmatprep.subr.bf16.mxu1 %v6463_v15 }
 0x190   : > { %4332 = vmatpush3.bf16.xpose.msk.msra.mxu0 %vm5520_vm6, %v5613_v58 }
 0x191   : > { %4364 = vmatpush3.bf16.xpose.msk.msra.mxu1 %vm5520_vm6, %v5615_v59  ;;  %4333 = vmatprep.subr.bf16.mxu0 %v6463_v15 }
 0x192   : > { %4365 = vmatprep.subr.bf16.mxu1 %v6463_v15 }
 0x198   : > { %4336 = vmatpush3.bf16.xpose.msk.msra.mxu0 %vm5520_vm6, %v5629_v0 }
 0x199   : > { %4368 = vmatpush3.bf16.xpose.msk.msra.mxu1 %vm5520_vm6, %v5631_v1  ;;  %4337 = vmatprep.subr.bf16.mxu0 %v6463_v15 }
 0x19a   : > { %4369 = vmatprep.subr.bf16.mxu1 %v6463_v15 }
 0x1a0   : > { %4340 = vmatpush3.bf16.xpose.msk.msra.mxu0 %vm5520_vm6, %v5645_v6 }
 0x1a1   : > { %4372 = vmatpush3.bf16.xpose.msk.msra.mxu1 %vm5520_vm6, %v5648_v8  ;;  %4373 = vmatprep.subr.bf16.mxu0 %v6463_v15 }
 0x1a2   : > { %4405 = vmatprep.subr.bf16.mxu1 %v6463_v15 }
 0x1a7   : > { %3750 = vmatmul.mubr.msk.f32.vlgmr.msra.gmra.mrb[0].mxu0 %vm1168_vm5, %v5667_v18  ;;  %v1055_v18 = vld [vmem:[%s5491_s13 + $0x210] sm:$0xff] }
 0x1a8   : > { %3785 = vmatmul.mubr.msk.f32.vlgmr.msra.gmra.mrb[0].mxu1 %vm1168_vm5, %v5670_v21  ;;  %4376 = vmatpush3.bf16.xpose.msk.msra.mxu0 %vm5520_vm6, %v5672_v22  ;;  %v1056_v21 = vld [vmem:[%s5491_s13 + $0x218] sm:$0xff] }
 0x1a9   : > { %4408 = vmatpush3.bf16.xpose.msk.msra.mxu1 %vm5520_vm6, %v5674_v23  ;;  %4377 = vmatprep.subr.bf16.mxu0 %v6463_v15  ;;  %v5839_v55 = vpack.c.bf16 %v1056_v21, %v1055_v18  ;;  %v1063_v18 = vld [vmem:[%s5491_s13 + $0x250] sm:$0xff]  ;;  %v1064_v21 = vld [vmem:[%s5491_s13 + $0x258] sm:$0xff] }
 0x1aa   : > { %4409 = vmatprep.subr.bf16.mxu1 %v6463_v15  ;;  %3819 = vmatprep.mubr.msk.f32.mxu0 %vm5059_vm7, %v6451_v20  ;;  %v5903_v61 = vpack.c.bf16 %v1064_v21, %v1063_v18 }
 0x1ab   : > { %3854 = vmatprep.mubr.msk.f32.mxu1 %vm5059_vm7, %v6451_v20 }
 0x1b0   : > { %4380 = vmatpush3.bf16.xpose.msk.msra.mxu0 %vm5520_vm6, %v5701_v33 }
 0x1b1   : > { %4412 = vmatpush3.bf16.xpose.msk.msra.mxu1 %vm5520_vm6, %v5703_v34  ;;  %4381 = vmatprep.subr.bf16.mxu0 %v6463_v15 }
 0x1b2   : > { %4413 = vmatprep.subr.bf16.mxu1 %v6463_v15 }
 0x1b8   : > { %4384 = vmatpush3.bf16.xpose.msk.msra.mxu0 %vm5520_vm6, %v5717_v39 }
 0x1b9   : > { %4416 = vmatpush3.bf16.xpose.msk.msra.mxu1 %vm5520_vm6, %v5719_v42  ;;  %4385 = vmatprep.subr.bf16.mxu0 %v6463_v15 }
 0x1ba   : > { %4417 = vmatprep.subr.bf16.mxu1 %v6463_v15 }
 0x1c0   : > { %4388 = vmatpush3.bf16.xpose.msk.msra.mxu0 %vm5520_vm6, %v5733_v49 }
 0x1c1   : > { %4420 = vmatpush3.bf16.xpose.msk.msra.mxu1 %vm5520_vm6, %v5735_v50  ;;  %4389 = vmatprep.subr.bf16.mxu0 %v6463_v15 }
 0x1c2   : > { %4421 = vmatprep.subr.bf16.mxu1 %v6463_v15 }
 0x1c8   : > { %4392 = vmatpush3.bf16.xpose.msk.msra.mxu0 %vm5520_vm6, %v5749_v57 }
 0x1c9   : > { %4424 = vmatpush3.bf16.xpose.msk.msra.mxu1 %vm5520_vm6, %v5751_v60  ;;  %4393 = vmatprep.subr.bf16.mxu0 %v6463_v15 }
 0x1ca   : > { %4425 = vmatprep.subr.bf16.mxu1 %v6463_v15 }
 0x1d0   : > { %4396 = vmatpush3.bf16.xpose.msk.msra.mxu0 %vm5520_vm6, %v5765_v3 }
 0x1d1   : > { %4428 = vmatpush3.bf16.xpose.msk.msra.mxu1 %vm5520_vm6, %v5767_v4  ;;  %4397 = vmatprep.subr.bf16.mxu0 %v6463_v15 }
 0x1d2   : > { %4429 = vmatprep.subr.bf16.mxu1 %v6463_v15 }
 0x1d8   : > { %4400 = vmatpush3.bf16.xpose.msk.msra.mxu0 %vm5520_vm6, %v5781_v11 }
 0x1d9   : > { %4432 = vmatpush3.bf16.xpose.msk.msra.mxu1 %vm5520_vm6, %v5783_v13  ;;  %4401 = vmatprep.subr.bf16.mxu0 %v6463_v15 }
 0x1da   : > { %4433 = vmatprep.subr.bf16.mxu1 %v6463_v15 }
 0x1e0   : > { %4404 = vmatpush3.bf16.xpose.msk.msra.mxu0 %vm5520_vm6, %v5797_v31 }
 0x1e1   : > { %4436 = vmatpush3.bf16.xpose.msk.msra.mxu1 %vm5520_vm6, %v5799_v32  ;;  %4437 = vmatprep.subr.bf16.mxu0 %v6463_v15 }
 0x1e2   : > { %4469 = vmatprep.subr.bf16.mxu1 %v6463_v15 }
 0x1e7   : > { %3820 = vmatmul.mubr.msk.f32.vlgmr.msra.gmra.mrb[2].mxu0 %vm1168_vm5, %v1164_v43  ;;  %v5887_v43 = vpack.c.bf16 %v1062_v36, %v1061_v35  ;;  %v1067_v35 = vld [vmem:[%s5491_s13 + $0x270] sm:$0xff]  ;;  %v1068_v36 = vld [vmem:[%s5491_s13 + $0x278] sm:$0xff] }
 0x1e8   : > { %3855 = vmatmul.mubr.msk.f32.vlgmr.msra.gmra.mrb[2].mxu1 %vm1168_vm5, %v1166_v44  ;;  %4440 = vmatpush3.bf16.xpose.msk.msra.mxu0 %vm5520_vm6, %v5817_v45  ;;  %v5889_v44 = vpack.c.bf16 %v1078_v38, %v1077_v37  ;;  %v1083_v37 = vld [vmem:[%s5491_s13 + $0x2f0] sm:$0xff]  ;;  %v1084_v38 = vld [vmem:[%s5491_s13 + $0x2f8] sm:$0xff]  ;;  %v5935_v18 = vpack.c.bf16 %v1068_v36, %v1067_v35 }
 0x1e9   : > { %4472 = vmatpush3.bf16.xpose.msk.msra.mxu1 %vm5520_vm6, %v5819_v48  ;;  %4441 = vmatprep.subr.bf16.mxu0 %v6463_v15  ;;  %v5937_v21 = vpack.c.bf16 %v1084_v38, %v1083_v37  ;;  %v1087_v35 = vld [vmem:[%s5491_s13 + $0x310] sm:$0xff]  ;;  %v1088_v36 = vld [vmem:[%s5491_s13 + $0x318] sm:$0xff] }
 0x1ea   : > { %4473 = vmatprep.subr.bf16.mxu1 %v6463_v15  ;;  %3889 = vmatprep.mubr.msk.f32.mxu0 %vm5059_vm7, %v6451_v20  ;;  %6490 = vst [vmem:[#allocation24_spill] sm:$0xff] %v5935_v18  ;;  %v1103_v37 = vld [vmem:[%s5491_s13 + $0x390] sm:$0xff]  ;;  %v1104_v38 = vld [vmem:[%s5491_s13 + $0x398] sm:$0xff]  ;;  %v5975_v51 = vpack.c.bf16 %v1088_v36, %v1087_v35  ;;  %v1105_v35 = vld [vmem:[%s5491_s13 + $0x3a0] sm:$0xff] }
 0x1eb   : > { %3924 = vmatprep.mubr.msk.f32.mxu1 %vm5059_vm7, %v6451_v20  ;;  %6491 = vst [vmem:[#allocation25_spill] sm:$0xff] %v5937_v21  ;;  %v5977_v54 = vpack.c.bf16 %v1104_v38, %v1103_v37  ;;  %v1106_v36 = vld [vmem:[%s5491_s13 + $0x3a8] sm:$0xff]  ;;  %v5991_v37 = vpack.c.bf16 %v1090_v2, %v1089_v63  ;;  %v1107_v63 = vld [vmem:[%s5491_s13 + $0x3b0] sm:$0xff]  ;;  %v1108_v2 = vld [vmem:[%s5491_s13 + $0x3b8] sm:$0xff] }
 0x1ec   : > { %6494 = vst [vmem:[#allocation28_spill] sm:$0xff] %v5975_v51  ;;  %v5993_v38 = vpack.c.bf16 %v1106_v36, %v1105_v35  ;;  %v6009_v36 = vpack.c.bf16 %v1108_v2, %v1107_v63 }
 0x1ed   : > { %6495 = vst [vmem:[#allocation29_spill] sm:$0xff] %v5977_v54  ;;  %6496 = vst [vmem:[#allocation30_spill] sm:$0xff] %v5991_v37 }
 0x1ee   : > { %6497 = vst [vmem:[#allocation31_spill] sm:$0xff] %v5993_v38  ;;  %6499 = vst [vmem:[#allocation33_spill] sm:$0xff] %v6009_v36 }
 0x1f0   : > { %4444 = vmatpush3.bf16.xpose.msk.msra.mxu0 %vm5520_vm6, %v5839_v55 }
 0x1f1   : > { %4476 = vmatpush3.bf16.xpose.msk.msra.mxu1 %vm5520_vm6, %v5841_v56  ;;  %4445 = vmatprep.subr.bf16.mxu0 %v6463_v15 }
 0x1f2   : > { %4477 = vmatprep.subr.bf16.mxu1 %v6463_v15 }
 0x1f8   : > { %4448 = vmatpush3.bf16.xpose.msk.msra.mxu0 %vm5520_vm6, %v5855_v5 }
 0x1f9   : > { %4480 = vmatpush3.bf16.xpose.msk.msra.mxu1 %vm5520_vm6, %v5857_v7  ;;  %4449 = vmatprep.subr.bf16.mxu0 %v6463_v15 }
 0x1fa   : > { %4481 = vmatprep.subr.bf16.mxu1 %v6463_v15 }
 0x200   : > { %4452 = vmatpush3.bf16.xpose.msk.msra.mxu0 %vm5520_vm6, %v5871_v27 }
 0x201   : > { %4484 = vmatpush3.bf16.xpose.msk.msra.mxu1 %vm5520_vm6, %v5873_v30  ;;  %4453 = vmatprep.subr.bf16.mxu0 %v6463_v15 }
 0x202   : > { %4485 = vmatprep.subr.bf16.mxu1 %v6463_v15 }
 0x208   : > { %4456 = vmatpush3.bf16.xpose.msk.msra.mxu0 %vm5520_vm6, %v5887_v43 }
 0x209   : > { %4488 = vmatpush3.bf16.xpose.msk.msra.mxu1 %vm5520_vm6, %v5889_v44  ;;  %4457 = vmatprep.subr.bf16.mxu0 %v6463_v15 }
 0x20a   : > { %4489 = vmatprep.subr.bf16.mxu1 %v6463_v15 }
 0x210   : > { %4460 = vmatpush3.bf16.xpose.msk.msra.mxu0 %vm5520_vm6, %v5903_v61 }
 0x211   : > { %4492 = vmatpush3.bf16.xpose.msk.msra.mxu1 %vm5520_vm6, %v5905_v62  ;;  %4461 = vmatprep.subr.bf16.mxu0 %v6463_v15 }
 0x212   : > { %4493 = vmatprep.subr.bf16.mxu1 %v6463_v15 }
 0x218   : > { %4464 = vmatpush3.bf16.xpose.msk.msra.mxu0 %vm5520_vm6, %v5919_v14 }
 0x219   : > { %4496 = vmatpush3.bf16.xpose.msk.msra.mxu1 %vm5520_vm6, %v5921_v24  ;;  %4465 = vmatprep.subr.bf16.mxu0 %v6463_v15 }
 0x21a   : > { %4497 = vmatprep.subr.bf16.mxu1 %v6463_v15 }
 0x220   : > { %4468 = vmatpush3.bf16.xpose.msk.msra.mxu0 %vm5520_vm6, %v5935_v18 }
 0x221   : > { %4500 = vmatpush3.bf16.xpose.msk.msra.mxu1 %vm5520_vm6, %v5937_v21  ;;  %4501 = vmatprep.subr.bf16.mxu0 %v6463_v15 }
 0x222   : > { %4533 = vmatprep.subr.bf16.mxu1 %v6463_v15 }
 0x227   : > { %3890 = vmatmul.mubr.msk.f32.vlgmr.msra.gmra.mrb[4].mxu0 %vm1168_vm5, %v5661_v12 }
 0x228   : > { %3925 = vmatmul.mubr.msk.f32.vlgmr.msra.gmra.mrb[4].mxu1 %vm1168_vm5, %v5681_v26  ;;  %4504 = vmatpush3.bf16.xpose.msk.msra.mxu0 %vm5520_vm6, %v5951_v9 }
 0x229   : > { %4536 = vmatpush3.bf16.xpose.msk.msra.mxu1 %vm5520_vm6, %v5953_v10  ;;  %4505 = vmatprep.subr.bf16.mxu0 %v6463_v15 }
 0x22a   : > { %4537 = vmatprep.subr.bf16.mxu1 %v6463_v15  ;;  %3959 = vmatprep.mubr.msk.f32.mxu0 %vm5059_vm7, %v6451_v20 }
 0x22b   : > { %3994 = vmatprep.mubr.msk.f32.mxu1 %vm5059_vm7, %v6451_v20  ;;  %v1092_v20 = vld [vmem:[%s5491_s13 + $0x338] sm:$0xff] }
 0x22c   : > { %v6007_v35 = vpack.c.bf16 %v1092_v20, %v1091_v25  ;;  %v1109_v20 = vld [vmem:[%s5491_s13 + $0x3c0] sm:$0xff]  ;;  %v1110_v25 = vld [vmem:[%s5491_s13 + $0x3c8] sm:$0xff] }
 0x22d   : > { %v6025_v2 = vpack.c.bf16 %v1110_v25, %v1109_v20 }
 0x22e   : > { %6498 = vst [vmem:[#allocation32_spill] sm:$0xff] %v6007_v35 }
 0x22f   : > { %6501 = vst [vmem:[#allocation35_spill] sm:$0xff] %v6025_v2 }
 0x230   : > { %4508 = vmatpush3.bf16.xpose.msk.msra.mxu0 %vm5520_vm6, %v5975_v51  ;;  %v1116_v51 = vld [vmem:[%s5491_s13 + $0x3f8] sm:$0xff] }
 0x231   : > { %4540 = vmatpush3.bf16.xpose.msk.msra.mxu1 %vm5520_vm6, %v5977_v54  ;;  %4509 = vmatprep.subr.bf16.mxu0 %v6463_v15  ;;  %v1115_v54 = vld [vmem:[%s5491_s13 + $0x3f0] sm:$0xff] }
 0x232   : > { %4541 = vmatprep.subr.bf16.mxu1 %v6463_v15 }
 0x238   : > { %4512 = vmatpush3.bf16.xpose.msk.msra.mxu0 %vm5520_vm6, %v5991_v37  ;;  %v1094_v37 = vld [vmem:[%s5491_s13 + $0x348] sm:$0xff] }
 0x239   : > { %4544 = vmatpush3.bf16.xpose.msk.msra.mxu1 %vm5520_vm6, %v5993_v38  ;;  %4513 = vmatprep.subr.bf16.mxu0 %v6463_v15  ;;  %v1093_v38 = vld [vmem:[%s5491_s13 + $0x340] sm:$0xff] }
 0x23a   : > { %4545 = vmatprep.subr.bf16.mxu1 %v6463_v15  ;;  %v6023_v63 = vpack.c.bf16 %v1094_v37, %v1093_v38  ;;  %v1111_v37 = vld [vmem:[%s5491_s13 + $0x3d0] sm:$0xff]  ;;  %v1112_v38 = vld [vmem:[%s5491_s13 + $0x3d8] sm:$0xff] }
 0x23b   : > { %v6041_v25 = vpack.c.bf16 %v1112_v38, %v1111_v37 }
 0x23c   : > { %6500 = vst [vmem:[#allocation34_spill] sm:$0xff] %v6023_v63 }
 0x23d   : > { %6503 = vst [vmem:[#allocation37_spill] sm:$0xff] %v6041_v25 }
 0x240   : > { %4516 = vmatpush3.bf16.xpose.msk.msra.mxu0 %vm5520_vm6, %v6007_v35  ;;  %v1096_v35 = vld [vmem:[%s5491_s13 + $0x358] sm:$0xff] }
 0x241   : > { %4548 = vmatpush3.bf16.xpose.msk.msra.mxu1 %vm5520_vm6, %v6009_v36  ;;  %4517 = vmatprep.subr.bf16.mxu0 %v6463_v15  ;;  %v1095_v36 = vld [vmem:[%s5491_s13 + $0x350] sm:$0xff] }
 0x242   : > { %4549 = vmatprep.subr.bf16.mxu1 %v6463_v15  ;;  %v6039_v20 = vpack.c.bf16 %v1096_v35, %v1095_v36  ;;  %v1113_v35 = vld [vmem:[%s5491_s13 + $0x3e0] sm:$0xff]  ;;  %v1114_v36 = vld [vmem:[%s5491_s13 + $0x3e8] sm:$0xff] }
 0x243   : > { %v6057_v38 = vpack.c.bf16 %v1114_v36, %v1113_v35  ;;  %v1165_v35 = vcombine.high %v5661_v12, %v5661_v12 }
 0x244   : > { %6502 = vst [vmem:[#allocation36_spill] sm:$0xff] %v6039_v20 }
 0x245   : > { %6505 = vst [vmem:[#allocation39_spill] sm:$0xff] %v6057_v38 }
 0x248   : > { %4520 = vmatpush3.bf16.xpose.msk.msra.mxu0 %vm5520_vm6, %v6023_v63  ;;  %v1098_v63 = vld [vmem:[%s5491_s13 + $0x368] sm:$0xff] }
 0x249   : > { %4552 = vmatpush3.bf16.xpose.msk.msra.mxu1 %vm5520_vm6, %v6025_v2  ;;  %4521 = vmatprep.subr.bf16.mxu0 %v6463_v15  ;;  %v1097_v2 = vld [vmem:[%s5491_s13 + $0x360] sm:$0xff] }
 0x24a   : > { %4553 = vmatprep.subr.bf16.mxu1 %v6463_v15  ;;  %v6055_v37 = vpack.c.bf16 %v1098_v63, %v1097_v2  ;;  %v6073_v2 = vpack.c.bf16 %v1116_v51, %v1115_v54 }
 0x24c   : > { %6504 = vst [vmem:[#allocation38_spill] sm:$0xff] %v6055_v37  ;;  %6507 = vst [vmem:[#allocation41_spill] sm:$0xff] %v6073_v2 }
 0x250   : > { %4524 = vmatpush3.bf16.xpose.msk.msra.mxu0 %vm5520_vm6, %v6039_v20  ;;  %v1100_v20 = vld [vmem:[%s5491_s13 + $0x378] sm:$0xff] }
 0x251   : > { %4556 = vmatpush3.bf16.xpose.msk.msra.mxu1 %vm5520_vm6, %v6041_v25  ;;  %4525 = vmatprep.subr.bf16.mxu0 %v6463_v15  ;;  %v1099_v25 = vld [vmem:[%s5491_s13 + $0x370] sm:$0xff] }
 0x252   : > { %4557 = vmatprep.subr.bf16.mxu1 %v6463_v15  ;;  %v6071_v63 = vpack.c.bf16 %v1100_v20, %v1099_v25  ;;  %v1167_v20 = vcombine.high %v5681_v26, %v5681_v26 }
 0x254   : > { %6506 = vst [vmem:[#allocation40_spill] sm:$0xff] %v6071_v63 }
 0x258   : > { %4528 = vmatpush3.bf16.xpose.msk.msra.mxu0 %vm5520_vm6, %v6055_v37 }
 0x259   : > { %4560 = vmatpush3.bf16.xpose.msk.msra.mxu1 %vm5520_vm6, %v6057_v38  ;;  %4529 = vmatprep.subr.bf16.mxu0 %v6463_v15 }
 0x25a   : > { %4561 = vmatprep.subr.bf16.mxu1 %v6463_v15 }
 0x260   : > { %4532 = vmatpush3.bf16.xpose.msk.msra.mxu0 %vm5520_vm6, %v6071_v63 }
 0x261   : > { %4564 = vmatpush3.bf16.xpose.msk.msra.mxu1 %vm5520_vm6, %v6073_v2  ;;  %4565 = vmatprep.subr.bf16.mxu0 %v6463_v15 }
 0x262   : > { %4589 = vmatprep.subr.bf16.mxu1 %v6463_v15 }
 0x267   : > { %3960 = vmatmul.mubr.msk.f32.vlgmr.msra.gmra.mrb[6].mxu0 %vm1168_vm5, %v1165_v35 }
 0x268   : > { %3995 = vmatmul.mubr.msk.f32.vlgmr.msra.gmra.mrb[6].mxu1 %vm1168_vm5, %v1167_v20  ;;  %4567 = vmatpush3.bf16.msra.mxu0 %v5516_v16 }
 0x269   : > { %4591 = vmatpush3.bf16.msra.mxu1 %v5525_v19  ;;  %4568 = vmatprep.subr.bf16.mxu0 %v6463_v15 }
 0x26a   : > { %4592 = vmatprep.subr.bf16.mxu1 %v6463_v15  ;;  %4029 = vmatprep.mubr.msk.f32.mxu0 %vm5059_vm7, %v6508_v17 }
 0x26b   : > { %4064 = vmatprep.mubr.msk.f32.mxu1 %vm5059_vm7, %v6508_v17 }
 0x26c   : > { %4570 = vmatpush3.bf16.msra.mxu0 %v5543_v28 }
 0x26d   : > { %4594 = vmatpush3.bf16.msra.mxu1 %v5545_v29  ;;  %4571 = vmatprep.subr.bf16.mxu0 %v6463_v15 }
 0x26e   : > { %4595 = vmatprep.subr.bf16.mxu1 %v6463_v15 }
 0x270   : > { %4573 = vmatpush3.bf16.msra.mxu0 %v5565_v40 }
 0x271   : > { %4597 = vmatpush3.bf16.msra.mxu1 %v5567_v41  ;;  %4574 = vmatprep.subr.bf16.mxu0 %v6463_v15 }
 0x272   : > { %4598 = vmatprep.subr.bf16.mxu1 %v6463_v15 }
 0x274   : > { %4576 = vmatpush3.bf16.msra.mxu0 %v5581_v46 }
 0x275   : > { %4600 = vmatpush3.bf16.msra.mxu1 %v5583_v47  ;;  %4577 = vmatprep.subr.bf16.mxu0 %v6463_v15 }
 0x276   : > { %4601 = vmatprep.subr.bf16.mxu1 %v6463_v15 }
 0x278   : > { %4579 = vmatpush3.bf16.msra.mxu0 %v5597_v52 }
 0x279   : > { %4603 = vmatpush3.bf16.msra.mxu1 %v5599_v53  ;;  %4580 = vmatprep.subr.bf16.mxu0 %v6463_v15 }
 0x27a   : > { %v1285_v16 = vpop.f32.mrb[0].mxu0  ;;  %4604 = vmatprep.subr.bf16.mxu1 %v6463_v15 }
 0x27b   : > { %v1405_v19 = vpop.f32.mrb[0].mxu1  ;;  %v3751_v28 = vpop.f32.mrb[1].mxu0 }
 0x27c   : > { %v3786_v29 = vpop.f32.mrb[1].mxu1  ;;  %4582 = vmatpush3.bf16.msra.mxu0 %v5613_v58 }
 0x27d   : > { %4606 = vmatpush3.bf16.msra.mxu1 %v5615_v59  ;;  %4583 = vmatprep.subr.bf16.mxu0 %v6463_v15 }
 0x27e   : > { %4607 = vmatprep.subr.bf16.mxu1 %v6463_v15 }
 0x280   : > { %4585 = vmatpush3.bf16.msra.mxu0 %v5629_v0  ;;  %v2129_v0 = vld [vmem:[%s5489_s23] sm:$0xff]  ;;  %s3403_s23 = sshll.u32 %s5036_s29, 7 }
 0x281   : > { %4609 = vmatpush3.bf16.msra.mxu1 %v5631_v1  ;;  %4586 = vmatprep.subr.bf16.mxu0 %v6463_v15  ;;  %v2131_v1 = vrot.slane %v2129_v0, 1  ;;  %v2132_v12 = vrot.slane %v2129_v0, 2  ;;  %v6128_v54 = vadd.f32 %v2129_v0, %v1285_v16  ;;  %v2135_v35 = vrot.slane %v2129_v0, 5  ;;  %s2866_s16 = sshra.s32 %s3403_s23, 7 }
 0x282   : > { %4610 = vmatprep.subr.bf16.mxu1 %v6463_v15  ;;  %v2137_v16 = vrot.slane %v2129_v0, 7  ;;  %s3404_s18 = sshll.u32 %s2866_s16, 3 }
 0x283   : > { %v6126_v26 = vadd.f32 %v2131_v1, %v1405_v19  ;;  %s2869_s15 = scalar_lea.vmem %s5495_s25, %s3404_s18 [#allocation10] }
 0x284   : > { %4588 = vmatpush3.bf16.msra.mxu0 %v5645_v6  ;;  %v2133_v6 = vrot.slane %v2129_v0, 3 }
 0x285   : > { %4612 = vmatpush3.bf16.msra.mxu1 %v5648_v8  ;;  %4613 = vmatprep.subr.bf16.mxu0 %v6463_v15  ;;  %v2134_v8 = vrot.slane %v2129_v0, 4  ;;  %v2163_v25 = vrot.slane %v6126_v26, 7 }
 0x286   : > { %4637 = vmatprep.subr.bf16.mxu1 %v6463_v15 }
 0x287   : > { %v2165_v29 = vsel %vm2164_vm8, %v2163_v25, %v6128_v54 }
 0x2ba   : > { %v1525_v40 = vpop.f32.mrb[2].mxu0 }
 0x2bb   : > { %v3821_v41 = vpop.f32.mrb[3].mxu0  ;;  %v1645_v46 = vpop.f32.mrb[2].mxu1  ;;  %v2148_v51 = vadd.f32 %v2132_v12, %v1525_v40 }
 0x2bc   : > { %v3856_v47 = vpop.f32.mrb[3].mxu1  ;;  %v2149_v36 = vadd.f32 %v2133_v6, %v1645_v46 }
 0x2bd   : > { %v2166_v20 = vrot.slane %v2148_v51, 6 }
 0x2be   : > { %v2169_v41 = vrot.slane %v2149_v36, 5 }
 0x2bf   : > { %v2168_v19 = vsel %vm2167_vm9, %v2166_v20, %v2165_v29 }
 0x2fa   : > { %v1765_v52 = vpop.f32.mrb[4].mxu0 }
 0x2fb   : > { %v3891_v53 = vpop.f32.mrb[5].mxu0  ;;  %v1885_v58 = vpop.f32.mrb[4].mxu1  ;;  %v2150_v28 = vadd.f32 %v2134_v8, %v1765_v52 }
 0x2fc   : > { %v3926_v59 = vpop.f32.mrb[5].mxu1  ;;  %v2151_v47 = vadd.f32 %v2135_v35, %v1885_v58  ;;  %v2136_v53 = vrot.slane %v2129_v0, 6 }
 0x2fd   : > { %v2172_v40 = vrot.slane %v2150_v28, 4  ;;  %v2171_v59 = vsel %vm2170_vm10, %v2169_v41, %v2168_v19  ;;  %v5062_v41 = vmov 0   ;;  %v6139_v19 = vld [vmem:[#allocation3] sm:$0xff] }
 0x2fe   : > { %v2175_v46 = vrot.slane %v2151_v47, 3  ;;  %4879 = vset.pattern.permute.xlu0 %v5062_v41  ;;  %4880 = vset.pattern.permute.xlu1 %v5062_v41 }
 0x2ff   : > { %v2174_v8 = vsel %vm2173_vm11, %v2172_v40, %v2171_v59 }
 0x300   : > { %v2177_v0 = vsel %vm2176_vm12, %v2175_v46, %v2174_v8  ;;  %v2859_v46 = vstv %s5036_s29 }
 0x33a   : > { %v2005_v1 = vpop.f32.mrb[6].mxu0 }
 0x33b   : > { %v2152_v12 = vadd.f32 %v2136_v53, %v2005_v1  ;;  %v2125_v6 = vpop.f32.mrb[6].mxu1  ;;  %v3961_v52 = vpop.f32.mrb[7].mxu0 }
 0x33c   : > { %v2153_v25 = vadd.f32 %v2137_v16, %v2125_v6  ;;  %v3996_v15 = vpop.f32.mrb[7].mxu1  ;;  %v6509_v16 = vlaneseq  ;;  %v2861_v6 = vld [vmem:[#allocation6] sm:$0xff] }
 0x33d   : > { %v2178_v58 = vrot.slane %v2152_v12, 2 }
 0x33e   : > { %v2181_v35 = vrot.slane %v2153_v25, 1  ;;  %v2858_v59 = vand.u32 127, %v6509_v16 }
 0x33f   : > { %v2180_v20 = vsel %vm2179_vm13, %v2178_v58, %v2177_v0 }
 0x340   : > { %v2183_v29 = vsel %vm2182_vm14, %v2181_v35, %v2180_v20  ;;  %vm6151_vm0 = vcmp.eq.s32.totalorder %v2858_v59, %v2859_v46 }
 0x341   : > { %2185 = vmax.xlane.f32.xlu0 %v2183_v29 }
 0x3ce   : > { %v2186_v40 = vpop.xlane.xlu0 %2185 }
 0x3cf   : > { %v6142_v15 = vmax.f32 %v6139_v19, %v2186_v40 }
 0x3d1   : > { %2856 = vst.msk [vmem:[#allocation3] sm:$0xff] %vm2262_vm15, %v6142_v15  ;;  %2193 = vperm.xlu0 %4879, %v6142_v15  }
 0x450   : > { %v2194_v52 = vpop.permute.xlu0 %2193 }
 0x451   : > { %v2195_v8 = vrot.slane %v2194_v52, 1  ;;  %v2196_v58 = vrot.slane %v2194_v52, 2  ;;  %v2197_v35 = vrot.slane %v2194_v52, 3  ;;  %v2198_v0 = vrot.slane %v2194_v52, 4 }
 0x452   : > { %v2199_v20 = vrot.slane %v2194_v52, 5  ;;  %v2200_v29 = vrot.slane %v2194_v52, 6  ;;  %v2210_v41 = vsub.f32 %v6128_v54, %v2194_v52  ;;  %v2862_v40 = vsel %vm6151_vm0, %v2194_v52, %v2861_v6 }
 0x453   : > { %v2211_v16 = vsub.f32 %v6126_v26, %v2195_v8  ;;  %v2212_v59 = vsub.f32 %v2148_v51, %v2196_v58  ;;  %v2213_v46 = vsub.f32 %v2149_v36, %v2197_v35  ;;  %v2214_v53 = vsub.f32 %v2150_v28, %v2198_v0  ;;  %2864 = vst.msk [vmem:[#allocation6] sm:$0xff] %vm2863_vm1, %v2862_v40 }
 0x454   : > { %v2218_v2 = vmul.f32 1.442695, %v2210_v41  ;;  %v2201_v63 = vrot.slane %v2194_v52, 7  ;;  %v2215_v38 = vsub.f32 %v2151_v47, %v2199_v20  ;;  %v2216_v37 = vsub.f32 %v2152_v12, %v2200_v29 }
 0x455   : > { %v2220_v10 = vmul.f32 1.442695, %v2211_v16  ;;  %v2222_v9 = vmul.f32 1.442695, %v2212_v59  ;;  %v2224_v21 = vmul.f32 1.442695, %v2213_v46 }
 0x456   : > { %4882 = vpow2.f32 %v2218_v2  ;;  %v2226_v18 = vmul.f32 1.442695, %v2214_v53  ;;  %v2217_v54 = vsub.f32 %v2153_v25, %v2201_v63  ;;  %v2228_v1 = vmul.f32 1.442695, %v2215_v38 }
 0x457   : > { %4884 = vpow2.f32 %v2220_v10  ;;  %v2230_v6 = vmul.f32 1.442695, %v2216_v37 }
 0x458   : > { %4886 = vpow2.f32 %v2222_v9  ;;  %v2232_v26 = vmul.f32 1.442695, %v2217_v54 }
 0x459   : > { %4888 = vpow2.f32 %v2224_v21  ;;  %v6512_v21 = vmov 0.0|0.0  }
 0x45a   : > { %4890 = vpow2.f32 %v2226_v18 }
 0x45b   : > { %4892 = vpow2.f32 %v2228_v1 }
 0x45c   : > { %4894 = vpow2.f32 %v2230_v6 }
 0x45d   : > { %4896 = vpow2.f32 %v2232_v26 }
 0x460   : > { %v4883_v51 = vpop.eup %4882 }
 0x461   : > { %v4885_v36 = vpop.eup %4884  ;;  %4030 = vmatmul.mubr.f32.vlgmr.msra.gmra.mrb[8].mxu0 %v4883_v51 }
 0x462   : > { %v6160_v28 = vpop.eup %4886  ;;  %4615 = vmatpush3.bf16.msra.mxu0 %v5672_v22  ;;  %4065 = vmatmul.mubr.f32.vlgmr.msra.gmra.mrb[8].mxu1 %v4885_v36  ;;  %v2244_v63 = vrot.slane %v4885_v36, 7 }
 0x463   : > { %v4889_v10 = vpop.eup %4888  ;;  %4639 = vmatpush3.bf16.msra.mxu1 %v5674_v23  ;;  %4616 = vmatprep.subr.bf16.mxu0 %v6512_v21  ;;  %v2246_v18 = vrot.slane %v6160_v28, 6 }
 0x464   : > { %v6166_v9 = vpop.eup %4890  ;;  %4640 = vmatprep.subr.bf16.mxu1 %v6512_v21  ;;  %v2245_v37 = vsel %vm2164_vm8, %v2244_v63, %v4883_v51  ;;  %v2248_v38 = vrot.slane %v4889_v10, 5  ;;  %4099 = vmatprep.mubr.msk.f32.mxu0 %vm5059_vm7, %v6508_v17 }
 0x465   : > { %v6172_v22 = vpop.eup %4892  ;;  %v2247_v2 = vsel %vm2167_vm9, %v2246_v18, %v2245_v37  ;;  %v2250_v23 = vrot.slane %v6166_v9, 4  ;;  %4134 = vmatprep.mubr.msk.f32.mxu1 %vm5059_vm7, %v6508_v17  ;;  %v2264_v18 = vld [vmem:[#allocation5] sm:$0xff] }
 0x466   : > { %v6178_v47 = vpop.eup %4894  ;;  %4618 = vmatpush3.bf16.msra.mxu0 %v5701_v33  ;;  %v2249_v12 = vsel %vm2170_vm10, %v2248_v38, %v2247_v2  ;;  %v2252_v25 = vrot.slane %v6172_v22, 3 }
 0x467   : > { %v6183_v53 = vpop.eup %4896  ;;  %4642 = vmatpush3.bf16.msra.mxu1 %v5703_v34  ;;  %4619 = vmatprep.subr.bf16.mxu0 %v6512_v21  ;;  %v2251_v52 = vsel %vm2173_vm11, %v2250_v23, %v2249_v12  ;;  %v2254_v8 = vrot.slane %v6178_v47, 2  ;;  %v6513_v34 = vsub.f32 %v6139_v19, %v6142_v15 }
 0x468   : > { %4643 = vmatprep.subr.bf16.mxu1 %v6512_v21  ;;  %v2253_v58 = vsel %vm2176_vm12, %v2252_v25, %v2251_v52  ;;  %v2256_v33 = vrot.slane %v6183_v53, 1 }
 0x469   : > { %v2255_v35 = vsel %vm2179_vm13, %v2254_v8, %v2253_v58  ;;  %v2189_v20 = vmul.f32 1.442695, %v6513_v34  ;;  %v2913_v58 = vld [vmem:[%s6438_s4] sm:$0xff] (!%p3405_p6) }
 0x46a   : > { %4621 = vmatpush3.bf16.msra.mxu0 %v5717_v39  ;;  %v2257_v0 = vsel %vm2182_vm14, %v2256_v33, %v2255_v35  ;;  %v5063_v33 = vmov (!%p3405_p6), 0   ;;  %v5064_v35 = vmov (!%p3405_p6), 0.0|0.0   ;;  %v2920_v34 = vld [vmem:[%s6439_s5] sm:$0xff] (!%p3405_p6) }
 0x46b   : > { %4645 = vmatpush3.bf16.msra.mxu1 %v5719_v42  ;;  %4622 = vmatprep.subr.bf16.mxu0 %v6512_v21  ;;  %2870 = vst [vmem:[%s2869_s15] sm:$0xff] %v2257_v0  ;;  %4898 = vpow2.f32 %v2189_v20  ;;  %v6514_v42 = vld [vmem:[#allocation24_spill] sm:$0xff]  ;;  %v2921_v20 = vld [vmem:[%s6439_s5 + $0x8] sm:$0xff] (!%p3405_p6) }
 0x46c   : > { %2259 = vadd.xlane.f32.xlu1 %v2257_v0  ;;  %4646 = vmatprep.subr.bf16.mxu1 %v6512_v21  ;;  %v2914_v0 = vld [vmem:[%s6438_s4 + $0x8] sm:$0xff] (!%p3405_p6) }
 0x46d   : > { %4900 = vset.pattern.permute.xlu0 (!%p3405_p6), %v5063_v33 }
 0x46e   : > { %4624 = vmatpush3.bf16.msra.mxu0 %v5733_v49  ;;  %v6515_v49 = vld [vmem:[#allocation25_spill] sm:$0xff] }
 0x46f   : > { %4648 = vmatpush3.bf16.msra.mxu1 %v5735_v50  ;;  %4625 = vmatprep.subr.bf16.mxu0 %v6512_v21  ;;  %v6516_v50 = vld [vmem:[#allocation26_spill] sm:$0xff] }
 0x470   : > { %4649 = vmatprep.subr.bf16.mxu1 %v6512_v21 }
 0x472   : > { %4627 = vmatpush3.bf16.msra.mxu0 %v5749_v57  ;;  %v6517_v57 = vld [vmem:[#allocation27_spill] sm:$0xff] }
 0x473   : > { %4651 = vmatpush3.bf16.msra.mxu1 %v5751_v60  ;;  %4628 = vmatprep.subr.bf16.mxu0 %v6512_v21  ;;  %v6518_v60 = vld [vmem:[#allocation28_spill] sm:$0xff] }
 0x474   : > { %4652 = vmatprep.subr.bf16.mxu1 %v6512_v21 }
 0x475   : > { %v6217_v39 = vpop.eup %4898 }
 0x476   : > { %4630 = vmatpush3.bf16.msra.mxu0 %v5765_v3  ;;  %v6519_v3 = vld [vmem:[#allocation29_spill] sm:$0xff] }
 0x477   : > { %4654 = vmatpush3.bf16.msra.mxu1 %v5767_v4  ;;  %4631 = vmatprep.subr.bf16.mxu0 %v6512_v21  ;;  %v6520_v4 = vld [vmem:[#allocation30_spill] sm:$0xff] }
 0x478   : > { %4655 = vmatprep.subr.bf16.mxu1 %v6512_v21 }
 0x47a   : > { %4633 = vmatpush3.bf16.msra.mxu0 %v5781_v11  ;;  %v6521_v11 = vld [vmem:[#allocation31_spill] sm:$0xff] }
 0x47b   : > { %4657 = vmatpush3.bf16.msra.mxu1 %v5783_v13  ;;  %4634 = vmatprep.subr.bf16.mxu0 %v6512_v21  ;;  %v6522_v13 = vld [vmem:[#allocation32_spill] sm:$0xff] }
 0x47c   : > { %4658 = vmatprep.subr.bf16.mxu1 %v6512_v21 }
 0x47d   : > { %2267 = vperm.xlu1 %4880, %v6217_v39  }
 0x47e   : > { %4636 = vmatpush3.bf16.msra.mxu0 %v5797_v31  ;;  %v6523_v31 = vld [vmem:[#allocation33_spill] sm:$0xff] }
 0x47f   : > { %4660 = vmatpush3.bf16.msra.mxu1 %v5799_v32  ;;  %4661 = vmatprep.subr.bf16.mxu0 %v6512_v21  ;;  %v6524_v32 = vld [vmem:[#allocation34_spill] sm:$0xff] }
 0x480   : > { %4685 = vmatprep.subr.bf16.mxu1 %v6512_v21 }
 0x481   : > { %4100 = vmatmul.mubr.f32.vlgmr.msra.gmra.mrb[10].mxu0 %v6160_v28  ;;  %4901 = vset.pattern.permute.xlu1 (!%p3405_p6), %v5063_v33 }
 0x482   : > { %4663 = vmatpush3.bf16.msra.mxu0 %v5817_v45  ;;  %4135 = vmatmul.mubr.f32.vlgmr.msra.gmra.mrb[10].mxu1 %v4889_v10  ;;  %v6525_v45 = vld [vmem:[#allocation35_spill] sm:$0xff] }
 0x483   : > { %4687 = vmatpush3.bf16.msra.mxu1 %v5819_v48  ;;  %4664 = vmatprep.subr.bf16.mxu0 %v6512_v21  ;;  %v6526_v48 = vld [vmem:[#allocation36_spill] sm:$0xff] }
 0x484   : > { %4688 = vmatprep.subr.bf16.mxu1 %v6512_v21  ;;  %4169 = vmatprep.mubr.msk.f32.mxu0 %vm5059_vm7, %v6508_v17 }
 0x485   : > { %4204 = vmatprep.mubr.msk.f32.mxu1 %vm5059_vm7, %v6508_v17 }
 0x486   : > { %4666 = vmatpush3.bf16.msra.mxu0 %v5839_v55  ;;  %v6527_v55 = vld [vmem:[#allocation37_spill] sm:$0xff] }
 0x487   : > { %4690 = vmatpush3.bf16.msra.mxu1 %v5841_v56  ;;  %4667 = vmatprep.subr.bf16.mxu0 %v6512_v21  ;;  %v6528_v56 = vld [vmem:[#allocation38_spill] sm:$0xff] }
 0x488   : > { %4691 = vmatprep.subr.bf16.mxu1 %v6512_v21 }
 0x48a   : > { %4669 = vmatpush3.bf16.msra.mxu0 %v5855_v5  ;;  %v6529_v5 = vld [vmem:[#allocation39_spill] sm:$0xff] }
 0x48b   : > { %4693 = vmatpush3.bf16.msra.mxu1 %v5857_v7  ;;  %4670 = vmatprep.subr.bf16.mxu0 %v6512_v21  ;;  %v6530_v7 = vld [vmem:[#allocation40_spill] sm:$0xff] }
 0x48c   : > { %4694 = vmatprep.subr.bf16.mxu1 %v6512_v21 }
 0x48e   : > { %4672 = vmatpush3.bf16.msra.mxu0 %v5871_v27  ;;  %v6531_v27 = vld [vmem:[#allocation41_spill] sm:$0xff] }
 0x48f   : > { %4696 = vmatpush3.bf16.msra.mxu1 %v5873_v30  ;;  %4673 = vmatprep.subr.bf16.mxu0 %v6512_v21  ;;  %v2234_v30 = vld [vmem:[#allocation4] sm:$0xff] }
 0x490   : > { %4697 = vmatprep.subr.bf16.mxu1 %v6512_v21 }
 0x492   : > { %4675 = vmatpush3.bf16.msra.mxu0 %v5887_v43  ;;  %v2235_v43 = vmul.f32 %v6217_v39, %v2234_v30  ;;  %v4764_v39 = vpack.c.bf16 (!%p3405_p6), %v2914_v0, %v2913_v58 }
 0x493   : > { %4699 = vmatpush3.bf16.msra.mxu1 %v5889_v44  ;;  %4676 = vmatprep.subr.bf16.mxu0 %v6512_v21 }
 0x494   : > { %4700 = vmatprep.subr.bf16.mxu1 %v6512_v21 }
 0x496   : > { %4678 = vmatpush3.bf16.msra.mxu0 %v5903_v61 }
 0x497   : > { %4702 = vmatpush3.bf16.msra.mxu1 %v5905_v62  ;;  %4679 = vmatprep.subr.bf16.mxu0 %v6512_v21 }
 0x498   : > { %4703 = vmatprep.subr.bf16.mxu1 %v6512_v21 }
 0x49a   : > { %4681 = vmatpush3.bf16.msra.mxu0 %v5919_v14 }
 0x49b   : > { %4705 = vmatpush3.bf16.msra.mxu1 %v5921_v24  ;;  %4682 = vmatprep.subr.bf16.mxu0 %v6512_v21 }
 0x49c   : > { %4706 = vmatprep.subr.bf16.mxu1 %v6512_v21 }
 0x49e   : > { %4684 = vmatpush3.bf16.msra.mxu0 %v6514_v42  ;;  %v4758_v42 = vpack.c.bf16 (!%p3405_p6), %v2921_v20, %v2920_v34 }
 0x49f   : > { %4708 = vmatpush3.bf16.msra.mxu1 %v6515_v49  ;;  %4709 = vmatprep.subr.bf16.mxu0 %v6512_v21  ;;  %v2915_v49 = vld [vmem:[%s6438_s4 + $0x10] sm:$0xff] (!%p3405_p6) }
 0x4a0   : > { %4733 = vmatprep.subr.bf16.mxu1 %v6512_v21 }
 0x4a1   : > { %4170 = vmatmul.mubr.f32.vlgmr.msra.gmra.mrb[12].mxu0 %v6166_v9 }
 0x4a2   : > { %4711 = vmatpush3.bf16.msra.mxu0 %v6516_v50  ;;  %4205 = vmatmul.mubr.f32.vlgmr.msra.gmra.mrb[12].mxu1 %v6172_v22  ;;  %v2916_v50 = vld [vmem:[%s6438_s4 + $0x18] sm:$0xff] (!%p3405_p6) }
 0x4a3   : > { %4735 = vmatpush3.bf16.msra.mxu1 %v6517_v57  ;;  %4712 = vmatprep.subr.bf16.mxu0 %v6512_v21  ;;  %v2922_v57 = vld [vmem:[%s6439_s5 + $0x10] sm:$0xff] (!%p3405_p6) }
 0x4a4   : > { %4736 = vmatprep.subr.bf16.mxu1 %v6512_v21  ;;  %4239 = vmatprep.mubr.msk.f32.mxu0 %vm5059_vm7, %v6508_v17 }
 0x4a5   : > { %4274 = vmatprep.mubr.msk.f32.mxu1 %vm5059_vm7, %v6508_v17 }
 0x4a6   : > { %4714 = vmatpush3.bf16.msra.mxu0 %v6518_v60  ;;  %v2923_v60 = vld [vmem:[%s6439_s5 + $0x18] sm:$0xff] (!%p3405_p6) }
 0x4a7   : > { %4738 = vmatpush3.bf16.msra.mxu1 %v6519_v3  ;;  %4715 = vmatprep.subr.bf16.mxu0 %v6512_v21  ;;  %v4767_v3 = vpack.c.bf16 (!%p3405_p6), %v2916_v50, %v2915_v49 }
 0x4a8   : > { %4739 = vmatprep.subr.bf16.mxu1 %v6512_v21 }
 0x4aa   : > { %4717 = vmatpush3.bf16.msra.mxu0 %v6520_v4  ;;  %v4761_v4 = vpack.c.bf16 (!%p3405_p6), %v2923_v60, %v2922_v57 }
 0x4ab   : > { %4741 = vmatpush3.bf16.msra.mxu1 %v6521_v11  ;;  %4718 = vmatprep.subr.bf16.mxu0 %v6512_v21  ;;  %v2917_v11 = vld [vmem:[%s6438_s4 + $0x20] sm:$0xff] (!%p3405_p6) }
 0x4ac   : > { %4742 = vmatprep.subr.bf16.mxu1 %v6512_v21 }
 0x4ae   : > { %4720 = vmatpush3.bf16.msra.mxu0 %v6522_v13  ;;  %v2918_v13 = vld [vmem:[%s6438_s4 + $0x28] sm:$0xff] (!%p3405_p6) }
 0x4af   : > { %4744 = vmatpush3.bf16.msra.mxu1 %v6523_v31  ;;  %4721 = vmatprep.subr.bf16.mxu0 %v6512_v21  ;;  %v4770_v31 = vpack.c.bf16 (!%p3405_p6), %v2918_v13, %v2917_v11 }
 0x4b0   : > { %4745 = vmatprep.subr.bf16.mxu1 %v6512_v21 }
 0x4b2   : > { %4723 = vmatpush3.bf16.msra.mxu0 %v6524_v32 }
 0x4b3   : > { %4747 = vmatpush3.bf16.msra.mxu1 %v6525_v45  ;;  %4724 = vmatprep.subr.bf16.mxu0 %v6512_v21 }
 0x4b4   : > { %4748 = vmatprep.subr.bf16.mxu1 %v6512_v21 }
 0x4b6   : > { %4726 = vmatpush3.bf16.msra.mxu0 %v6526_v48 }
 0x4b7   : > { %4750 = vmatpush3.bf16.msra.mxu1 %v6527_v55  ;;  %4727 = vmatprep.subr.bf16.mxu0 %v6512_v21 }
 0x4b8   : > { %4751 = vmatprep.subr.bf16.mxu1 %v6512_v21 }
 0x4ba   : > { %4729 = vmatpush3.bf16.msra.mxu0 %v6528_v56  ;;  %v5066_v56 = vmov (!%p3405_p6), 0.0  }
 0x4bb   : > { %4753 = vmatpush3.bf16.msra.mxu1 %v6529_v5  ;;  %4730 = vmatprep.subr.bf16.mxu0 %v6512_v21  ;;  %v2919_v5 = vld [vmem:[%s5484_s9] sm:$0xff] (!%p3405_p6) }
 0x4bc   : > { %4754 = vmatprep.subr.bf16.mxu1 %v6512_v21 }
 0x4be   : > { %4732 = vmatpush3.bf16.msra.mxu0 %v6530_v7  ;;  %v2880_v7 = vld [vmem:[#allocation3] sm:$0xff] (!%p3405_p6) }
 0x4bf   : > { %4756 = vmatpush3.bf16.msra.mxu1 %v6531_v27  ;;  %4763 = vmatprep.subr.bf16.mxu0 (!%p3405_p6), %v5064_v35  ;;  %v5067_v27 = vmov (!%p3405_p6), 1  }
 0x4c0   : > { %4757 = vmatprep.subr.bf16.mxu1 (!%p3405_p6), %v5064_v35 }
 0x4c1   : > { %4240 = vmatmul.mubr.f32.vlgmr.msra.gmra.mrb[14].mxu0 %v6178_v47 }
 0x4c2   : > { %4275 = vmatmul.mubr.f32.vlgmr.msra.gmra.mrb[14].mxu1 %v6183_v53  ;;  %4765 = vmatpush3.bf16.msra.mxu0 (!%p3405_p6), %v4764_v39 }
 0x4c3   : > { %4759 = vmatpush3.bf16.msra.mxu1 (!%p3405_p6), %v4758_v42  ;;  %4766 = vmatprep.subr.bf16.mxu0 (!%p3405_p6), %v5064_v35 }
 0x4c4   : > { %4760 = vmatprep.subr.bf16.mxu1 (!%p3405_p6), %v5064_v35  ;;  %4285 = vmatprep.mubr.msk.f32.mxu1 (!%p3405_p6), %vm5065_vm2, %v5066_v56 }
 0x4c5   : > { %4300 = vmatprep.mubr.msk.f32.mxu0 (!%p3405_p6), %vm5065_vm2, %v5066_v56 }
 0x4c6   : > { %4768 = vmatpush3.bf16.msra.mxu0 (!%p3405_p6), %v4767_v3 }
 0x4c7   : > { %4762 = vmatpush3.bf16.msra.mxu1 (!%p3405_p6), %v4761_v4  ;;  %4769 = vmatprep.subr.bf16.mxu0 (!%p3405_p6), %v5064_v35 }
 0x4ca   : > { %4771 = vmatpush3.bf16.msra.mxu0 (!%p3405_p6), %v4770_v31  ;;  %4286 = vmatmul.mubr.msk.f32.vlgmr.msra.gmra.mrb[0].mxu1 (!%p3405_p6), %vm2924_vm3, %v2919_v5 }
 0x4f9   : > { %v2260_v44 = vpop.xlane.xlu1 %2259 }
 0x4fa   : > { %v2261_v61 = vadd.f32 %v2260_v44, %v2235_v43 }
 0x4fc   : > { %2263 = vst.msk [vmem:[#allocation4] sm:$0xff] %vm2262_vm15, %v2261_v61  ;;  %v2881_v61 = vld [vmem:[#allocation6] sm:$0xff] (!%p3405_p6) }
 0x4fd   : > { %v2268_v9 = vpop.permute.xlu1 %2267 }
 0x4fe   : > { %v2270_v12 = vmul.f32 %v2268_v9, %v2264_v18 }
 0x503   : > { %v2875_v8 = vld [vmem:[#allocation4] sm:$0xff] (!%p3405_p6) }
 0x504   : > { %4904 = vrcp.f32 (!%p3405_p6), %v2875_v8 }
 0x50e   : > { %v4905_v32 = vpop.eup (!%p3405_p6), %4904 }
 0x50f   : > { %v2877_v45 = vmul.f32 (!%p3405_p6), %v4905_v32, %v2875_v8 }
 0x511   : > { %v2878_v48 = vsub.f32 (!%p3405_p6), 2.0, %v2877_v45 }
 0x513   : > { %v2879_v55 = vmul.f32 (!%p3405_p6), %v4905_v32, %v2878_v48 }
 0x515   : > { %2892 = vperm.xlu0 (!%p3405_p6), %4900, %v2879_v55  }
 0x519   : > { %2884 = vperm.xlu0 (!%p3405_p6), %4900, %v2880_v7  }
 0x51d   : > { %4903 = vset.pattern.permute.xlu0 (!%p3405_p6), %v5067_v27 }
 0x534   : > { %v2337_v62 = vpop.f32.mrb[8].mxu0 }
 0x535   : > { %v4031_v14 = vpop.f32.mrb[9].mxu0  ;;  %v2407_v24 = vpop.f32.mrb[8].mxu1 }
 0x536   : > { %v2839_v17 = vrot.slane %v2407_v24, 7  ;;  %v4066_v19 = vpop.f32.mrb[9].mxu1 }
 0x538   : > { %v2840_v15 = vsel %vm2164_vm8, %v2839_v17, %v2337_v62 }
 0x554   : > { %v2477_v29 = vpop.f32.mrb[10].mxu0 }
 0x555   : > { %v2841_v41 = vrot.slane %v2477_v29, 6  ;;  %v4101_v40 = vpop.f32.mrb[11].mxu0  ;;  %v2547_v16 = vpop.f32.mrb[10].mxu1 }
 0x556   : > { %v2843_v59 = vrot.slane %v2547_v16, 5  ;;  %v4136_v46 = vpop.f32.mrb[11].mxu1 }
 0x557   : > { %v2842_v54 = vsel %vm2167_vm9, %v2841_v41, %v2840_v15  ;;  %v2896_v41 = vld [vmem:[%s5495_s25] sm:$0xff] (!%p3405_p6) }
 0x558   : > { %v2844_v1 = vsel %vm2170_vm10, %v2843_v59, %v2842_v54  ;;  %v2904_v59 = vld [vmem:[%s5495_s25 + $0x8] sm:$0xff] (!%p3405_p6) }
 0x574   : > { %v2617_v6 = vpop.f32.mrb[12].mxu0 }
 0x575   : > { %v2845_v26 = vrot.slane %v2617_v6, 4  ;;  %v4171_v51 = vpop.f32.mrb[13].mxu0  ;;  %v2687_v36 = vpop.f32.mrb[12].mxu1 }
 0x576   : > { %v2847_v28 = vrot.slane %v2687_v36, 3  ;;  %v4206_v63 = vpop.f32.mrb[13].mxu1 }
 0x577   : > { %v2846_v10 = vsel %vm2173_vm11, %v2845_v26, %v2844_v1 }
 0x578   : > { %v2848_v21 = vsel %vm2176_vm12, %v2847_v28, %v2846_v10 }
 0x594   : > { %v2757_v37 = vpop.f32.mrb[14].mxu0  ;;  %v2893_v43 = vpop.permute.xlu0 (!%p3405_p6), %2892 }
 0x595   : > { %v2849_v38 = vrot.slane %v2757_v37, 2  ;;  %v4241_v22 = vpop.f32.mrb[15].mxu0  ;;  %v2827_v2 = vpop.f32.mrb[14].mxu1  ;;  %2874 = sbr.rel (%p3405_p6) target bundleno = 1671 (0x687), region = 90 }
 0x596   : > { %v2851_v23 = vrot.slane %v2827_v2, 1  ;;  %v4276_v47 = vpop.f32.mrb[15].mxu1 }
 0x597   : > { %v2850_v25 = vsel %vm2179_vm13, %v2849_v38, %v2848_v21 }
 0x598   : > { %v2852_v53 = vsel %vm2182_vm14, %v2851_v23, %v2850_v25  ;;  %v2885_v62 = vpop.permute.xlu0 (!%p3405_p6), %2884 }
 0x599   : > { %v2854_v52 = vadd.f32 %v2852_v53, %v2270_v12  ;;  %v2887_v14 = vsub.f32 (!%p3405_p6), %v2881_v61, %v2885_v62 }
 0x59b   : > { %2855 = vst.msk [vmem:[#allocation5] sm:$0xff] %vm1168_vm5, %v2854_v52  ;;  %v2888_v24 = vmul.f32 (!%p3405_p6), 1.442695, %v2887_v14 }
 0x59d   : > { %4906 = vpow2.f32 %v2888_v24  ;;  %v2994_v15 = vpop.f32.mrb[0].mxu1 }
 0x59e   : > { %v4287_v29 = vpop.f32.mrb[1].mxu1 }
 0x5a2   : > { %v2911_v30 = vld [vmem:[#allocation5] sm:$0xff] }
 0x5a3   : > { %v2912_v44 = vmul.f32 %v2911_v30, %v2893_v43 }
 0x5a5   : > { %4301 = vmatmul.mubr.msk.f32.vlgmr.msra.gmra.mrb[0].mxu0 %vm1168_vm5, %v2912_v44 }
 0x5a7   : > { %v4907_v17 = vpop.eup %4906 }
 0x5a8   : > { %v2895_v19 = vmul.f32 %v4907_v17, %v2893_v43 }
 0x5aa   : > { %2899 = vperm.xlu1 %4901, %v2895_v19  }
 0x5ae   : > { %4902 = vset.pattern.permute.xlu1 %v5067_v27 }
 0x5af   : > { %2906 = vperm.xlu1 %4902, %v2895_v19  }
 0x629   : > { %v2900_v40 = vpop.permute.xlu1 %2899 }
 0x62a   : > { %v2902_v16 = vmul.f32 %v2900_v40, %v2896_v41 }
 0x62c   : > { %2903 = vst [vmem:[%s5495_s25] sm:$0xff] %v2902_v16 }
 0x62e   : > { %v2907_v46 = vpop.permute.xlu1 %2906 }
 0x62f   : > { %v2909_v54 = vmul.f32 %v2907_v46, %v2904_v59 }
 0x631   : > { %2910 = vst [vmem:[%s5495_s25 + $0x8] sm:$0xff] %v2909_v54 }
 0x678   : > { %v3067_v1 = vpop.f32.mrb[0].mxu0 }
 0x679   : > { %v3068_v6 = vadd.f32 %v3067_v1, %v2994_v15  ;;  %v4302_v26 = vpop.f32.mrb[1].mxu0 }
 0x67b   : > { %4908 = vtanh.f32 %v3068_v6 }
 0x685   : > { %v4909_v51 = vpop.eup %4908 }
 0x686   : > { %3072 = vst.msk [vmem:[%s5493_s26] sm:$0xff] %vm2924_vm3, %v4909_v51 }
 0x687 PF: > { %s3410_s9 = sshll.u32 %s5040_s30, 7  ;;  %s3092_s8 = sshll.u32 %s5493_s26, 4  ;;  %s3093_s8 = int_to_ptr.vmem [resolvable:$true] %s3092_s8 }
 0x688   : > { %s6354_s29 = scalar_lea.hbm %s6440_s6, %s3410_s9  ;;  %s3074_s28 = scalar_lea.sflag [#allocation9], %s5473_s14 }
 0x689   : > { %s4910_s11 = scalar_lea.vmem %s3093_s8, 128  ;;  %s5068_s22 = smov [#allocation8]  }
 0x68a   : > { %p4911_p8 = scmp.ne.s32.totalorder %s3093_s8, %s4910_s11  ;;  %s4914_s12 = sshll.u32 %s5068_s22, 4  ;;  %s4915_s12 = int_to_ptr.vmem [resolvable:$false] %s4914_s12 }
 0x68b   : > { %s4916_s23 = scalar_lea.vmem %s4915_s12, 256  ;;  %p4917_p11 = scmp.lt.s32.totalorder %s3093_s8, %s4915_s12 }
 0x68c   : > { %p4912_p9 = pnand %p4911_p8, %p5182_p7  ;;  %p4918_p13 = scmp.lt.s32.totalorder %s4916_s23, %s4910_s11 }
 0x68e   : > { %p4913_p10 = pneg %p4912_p9  ;;  %p4919_p0 = por %p4918_p13, %p4917_p11 }
 0x690   : > { %p4920_p1 = pnand %p4919_p0, %p4913_p10 }
 0x692   : > { %4923 = shalt.err (!%p4920_p1)
}
 0x693   : > { %s4924_s26 = scalar_lea.hbm %s6354_s29, 128  ;;  %s4928_s15 = scalar_lea.hbm %s6440_s6, 256 }
 0x694   : > { %p4925_p2 = scmp.ne.s32.totalorder %s6354_s29, %s4924_s26  ;;  %p4929_p5 = scmp.lt.u32.totalorder %s6354_s29, %s6440_s6 }
 0x695   : > { %p4930_p6 = scmp.lt.u32.totalorder %s4928_s15, %s4924_s26  ;;  %p4932_p9 = scmp.lt.u32.totalorder %s4924_s26, %s6354_s29 }
 0x696   : > { %p4926_p3 = pnand %p4925_p2, %p5182_p7 }
 0x697   : > { %p4931_p8 = por %p4930_p6, %p4929_p5 }
 0x698   : > { %p4927_p4 = pneg %p4926_p3 }
 0x699   : > { %p4933_p10 = por %p4932_p9, %p4931_p8 }
 0x69b   : > { %p4934_p11 = pnand %p4933_p10, %p4927_p4 }
 0x69d   : > { %4937 = shalt.err (!%p4934_p11)
}
 0x69e   : > { %4773 = dma.vmem_to_hbm [thread:$0]  (%p5182_p7), %s3093_s8, 128, %s6354_s29, %s3074_s28  }
 0x69f   : > { %s3416_s13 = sshll.u32 %s5040_s30, 8  ;;  %s3106_s20 = sshll.u32 %s5495_s25, 4  ;;  %s3107_s20 = int_to_ptr.vmem [resolvable:$true] %s3106_s20 }
 0x6a0   : > { %s6380_s21 = scalar_lea.hbm %s6441_s7, %s3416_s13  ;;  %s3079_s11 = scalar_lea.sflag [#allocation11], %s5473_s14 }
 0x6a1   : > { %s4938_s22 = scalar_lea.vmem %s3107_s20, 256  ;;  %s5069_s12 = smov [#allocation10]  }
 0x6a2   : > { %p4939_p13 = scmp.ne.s32.totalorder %s3107_s20, %s4938_s22  ;;  %s4942_s23 = sshll.u32 %s5069_s12, 4  ;;  %s4943_s23 = int_to_ptr.vmem [resolvable:$false] %s4942_s23 }
 0x6a3   : > { %s4944_s26 = scalar_lea.vmem %s4943_s23, 512  ;;  %p4945_p2 = scmp.lt.s32.totalorder %s3107_s20, %s4943_s23 }
 0x6a4   : > { %p4940_p0 = pnand %p4939_p13, %p5182_p7  ;;  %p4946_p3 = scmp.lt.s32.totalorder %s4944_s26, %s4938_s22 }
 0x6a6   : > { %p4941_p1 = pneg %p4940_p0  ;;  %p4947_p4 = por %p4946_p3, %p4945_p2 }
 0x6a8   : > { %p4948_p5 = pnand %p4947_p4, %p4941_p1 }
 0x6aa   : > { %4951 = shalt.err (!%p4948_p5)
}
 0x6ab   : > { %s4952_s25 = scalar_lea.hbm %s6380_s21, 256  ;;  %s4956_s29 = scalar_lea.hbm %s6441_s7, 512 }
 0x6ac   : > { %p4953_p6 = scmp.ne.s32.totalorder %s6380_s21, %s4952_s25  ;;  %p4957_p10 = scmp.lt.u32.totalorder %s6380_s21, %s6441_s7 }
 0x6ad   : > { %p4958_p11 = scmp.lt.u32.totalorder %s4956_s29, %s4952_s25  ;;  %p4960_p0 = scmp.lt.u32.totalorder %s4952_s25, %s6380_s21 }
 0x6ae   : > { %p4954_p8 = pnand %p4953_p6, %p5182_p7 }
 0x6af   : > { %p4959_p13 = por %p4958_p11, %p4957_p10 }
 0x6b0   : > { %p4955_p9 = pneg %p4954_p8 }
 0x6b1   : > { %p4961_p1 = por %p4960_p0, %p4959_p13 }
 0x6b3   : > { %p4962_p2 = pnand %p4961_p1, %p4955_p9 }
 0x6b5   : > { %4965 = shalt.err (!%p4962_p2)
}
 0x6b6   : > { %4774 = dma.vmem_to_hbm [thread:$0]  (%p5182_p7), %s3107_s20, 256, %s6380_s21, %s3079_s11  }
 0x6b7 PF: > { %p4784_p3 = scmp.ge.s32.totalorder %s5052_s10, 2  ;;  %s3118_s18 = sand.u32 1, %s5016_s24  }
 0x6b8   : > { %s3119_s15 = scalar_lea.sflag [#allocation9], %s3118_s18 }
 0x6b9   : > { %p4778_p4 = pnand %p4784_p3, %p5190_p12 }
 0x6bb   : > { %5007 = dma.done.wait (!%p4778_p4), %s3119_s15, 128  }
 0x6bc   : > { %5009 = vsyncadd (!%p4778_p4), %s3119_s15, 4294967168  ;;  %s3128_s17 = scalar_lea.sflag [#allocation11], %s3118_s18 }
 0x6bd   : > { %5011 = dma.done.wait (!%p4778_p4), %s3128_s17, 256  }
 0x6be   : > { %5013 = vsyncadd (!%p4778_p4), %s3128_s17, 4294967040  ;;  %s24_s10 = sadd.s32 1, %s5052_s10   ;;  %s6533_s24 = sld [smem:[#allocation14_spill]] }
 0x6bf   : > { %p21_p5 = scmp.ge.s32.totalorder %s24_s10, 6   ;;  %s6534_s25 = sld [smem:[#allocation15_spill]] }
 0x6c0   : > { %s6535_s26 = sld [smem:[#allocation22_spill]]  ;;  %s6536_s27 = sld [smem:[#allocation16_spill]] }
 0x6c1   : > { %s6537_s28 = sld [smem:[#allocation23_spill]]  ;;  %s6538_s29 = sld [smem:[#allocation17_spill]] }
 0x6c2   : > { %s6539_s30 = sld [smem:[#allocation18_spill]]  ;;  %s6540_s8 = sld [smem:[#allocation19_spill]] }
 0x6c3   : > { %s6541_s9 = sld [smem:[#allocation20_spill]]  ;;  %23 = sbr.rel (!%p21_p5) target bundleno = 10 (0xa), region = 154 }
 0x6ca   :  { %3133 = vsyncpa [#allocation9], 1 }
 0x6cb   :  { %3135 = vsyncpa [#allocation9 + $0x1], 1 }
 0x6cc   :  { %3136 = vsyncpa [#allocation11], 1 }
 0x6cd   :  { %3138 = vsyncpa [#allocation11 + $0x1], 1 }

</bundles_post_ra>
